<compile_context>
chip_gen: v7x
topology: tpu7x:2x2x1
jax: 0.10.0
libtpu: 0.0.40
codegen_flags: <defaults>
</compile_context>

<pallas_src>
import math

import jax
import jax.numpy as jnp
from jax.experimental import pallas as pl
from jax.experimental.pallas import tpu as pltpu


def _pe_kernel(pos_ref, freq_ref, phase_ref, o_ref):
    """o[s, l] = sin(pos[s] * freq[l] + phase[l]).

    pos_ref   : (ts, 1)          super-row index column for this block
    freq_ref  : (1, lane_width)  R * inv_freq, tiled lane-dense
    phase_ref : (1, lane_width)  (lane//d_model)*inv_freq + {0, pi/2}
    o_ref     : (ts, lane_width) lane-dense packed PE block
    """
    o_ref[...] = jnp.sin(pos_ref[...] * freq_ref[...] + phase_ref[...])


def _build_pe_table_pallas(max_seq_len: int, d_model: int) -> jax.Array:
    """Compute the full (max_seq_len, d_model) PE table with a Pallas kernel."""
    assert d_model % 2 == 0, "PositionEncoding requires an even d_model"

    # --- lane-dense packing -------------------------------------------------
    # Fold R consecutive rows into the lane axis so the output last dim is a
    # multiple of 128.  R = 1 when d_model is already a multiple of 128.
    R = 128 // math.gcd(d_model, 128)
    lane_width = R * d_model                      # multiple of 128
    packed_rows = -(-max_seq_len // R)            # ceil(max_seq_len / R)

    # --- column-only quantities, computed ONCE in plain JAX ------------------
    j = jnp.arange(d_model, dtype=jnp.int32)
    two_i = ((j // 2) * 2).astype(jnp.float32)    # even/odd columns share freq
    inv_freq = 1.0 / jnp.power(jnp.float32(10000.0), two_i / jnp.float32(d_model))
    phase = jnp.where((j % 2) == 1, jnp.float32(math.pi / 2.0), jnp.float32(0.0))

    # Packed lane l <-> (row offset r = l // d_model, column c = l % d_model):
    #   pe[s*R + r, c] = sin(s*(R*inv_freq[c]) + (r*inv_freq[c] + phase[c]))
    inv_freq_tiled = jnp.tile(inv_freq, R)
    r_of_lane = jnp.repeat(jnp.arange(R, dtype=jnp.float32), d_model)
    freq_row = (jnp.float32(R) * inv_freq_tiled).reshape(1, lane_width)
    phase_row = (jnp.tile(phase, R) + r_of_lane * inv_freq_tiled).reshape(1, lane_width)
    pos_col = jnp.arange(packed_rows, dtype=jnp.float32).reshape(packed_rows, 1)

    # --- byte-budgeted seq-axis tiling ---------------------------------------
    row_bytes = lane_width * 4
    target_block_bytes = 2 * 1024 * 1024  # ~2 MiB per block: amortizes per-step
    #  overhead; double-buffered output (<= 4 MiB) stays far under v5e's 16 MiB
    #  scoped-VMEM default and v7x's 64 MiB physical VMEM, so no vmem_limit_bytes
    #  override is needed.
    ts = max(8, (target_block_bytes // row_bytes) // 8 * 8)
    if ts >= packed_rows:
        if packed_rows >= 16:
            # Keep >= 2 roughly balanced blocks so "parallel" actually splits
            # the work across v7x's 2 TensorCores (no-op on v5e/v6e).
            ts = ((packed_rows + 1) // 2 + 7) // 8 * 8
        else:
            ts = packed_rows          # tiny table: single full block
    grid = (pl.cdiv(packed_rows, ts),)

    packed = pl.pallas_call(
        _pe_kernel,
        out_shape=jax.ShapeDtypeStruct((packed_rows, lane_width), jnp.float32),
        grid=grid,
        in_specs=[
            pl.BlockSpec((ts, 1), lambda i: (i, 0)),           # position column
            pl.BlockSpec((1, lane_width), lambda i: (0, 0)),   # scaled freq row
            pl.BlockSpec((1, lane_width), lambda i: (0, 0)),   # phase row
        ],
        out_specs=pl.BlockSpec((ts, lane_width), lambda i: (i, 0)),
        compiler_params=pltpu.CompilerParams(
            dimension_semantics=("parallel",),
        ),
        cost_estimate=pl.CostEstimate(
            flops=2 * packed_rows * lane_width,                # mul + add / elem
            transcendentals=packed_rows * lane_width,          # one sin / elem
            bytes_accessed=packed_rows * lane_width * 4
            + 2 * lane_width * 4 + packed_rows * 4,
        ),
    )(pos_col, freq_row, phase_row)

    # (packed_rows, R*d_model) -> (packed_rows*R, d_model): identical row-major
    # layout so the reshape is free; slice off padded tail rows (if any).
    return packed.reshape(packed_rows * R, d_model)[:max_seq_len, :]


def _reference_pe(max_seq_len: int, d_model: int) -> jnp.ndarray:
    """Pure-JAX reference mirroring the PyTorch __init__ exactly."""
    pos = jnp.arange(max_seq_len, dtype=jnp.float32)[:, None]
    _2i = jnp.arange(0, d_model, 2, dtype=jnp.float32)
    div = jnp.power(10000.0, _2i / d_model)
    pe = jnp.zeros((max_seq_len, d_model), dtype=jnp.float32)
    pe = pe.at[:, 0::2].set(jnp.sin(pos / div))
    pe = pe.at[:, 1::2].set(jnp.cos(pos / div))
    return pe


class PositionEncoding:
    """JAX/Pallas port of the PyTorch PositionEncoding module."""

    def __init__(self, d_model: int, max_seq_len: int = 1000, use_pallas: bool = True):
        self.d_model = d_model
        self.max_seq_len = max_seq_len
        # One-shot, deterministic "parameter": the precomputed sinusoidal table.
        # For tiny tables the pure-JAX build avoids Pallas launch overhead
        # entirely (per perf review); default keeps the Pallas path.
        if use_pallas:
            self.pe = _build_pe_table_pallas(max_seq_len, d_model)
        else:
            self.pe = _reference_pe(max_seq_len, d_model)

    def __call__(self, x: jax.Array) -> jax.Array:
        batch_size, seq_len = x.shape  # x values are ignored; only shape matters
        return self.pe[:seq_len, :]


if __name__ == "__main__":
    d_model = 32
    max_seq_len = 1000   # PyTorch default; not a multiple of the row tile, so
                         # the ragged final block path is exercised too.
    batch, seq_len = 2, 8

    key = jax.random.PRNGKey(0)
    # x is a (batch, seq_len) tensor of token ids; only its shape is used.
    x = jax.random.randint(key, (batch, seq_len), 0, 100, dtype=jnp.int32)

    module = PositionEncoding(d_model, max_seq_len=max_seq_len)
    out = module(x)
    out = jax.block_until_ready(out)

    assert out.shape == (seq_len, d_model), out.shape
    assert out.dtype == jnp.float32, out.dtype
    assert module.pe.shape == (max_seq_len, d_model), module.pe.shape

    ref_full = _reference_pe(max_seq_len, d_model)

    # Forward slice: positions <= 7, so argument rounding differences are tiny.
    assert jnp.allclose(out, ref_full[:seq_len, :], atol=2e-5, rtol=1e-5), \
        "forward slice mismatch vs reference"

    # Full table (incl. ragged last block): cos folded as sin(x + pi/2) and
    # pos*inv_freq vs pos/div differ by O(arg * eps) ~ 2e-4 at pos ~ 1e3;
    # tolerance sized accordingly (values are in [-1, 1]).
    assert jnp.allclose(module.pe, ref_full, atol=1e-3, rtol=0.0), \
        "full PE table mismatch vs reference"

    print("KERNEL_OK")
</pallas_src>

<mosaic_0001>
module attributes {stable_mosaic.version = 11 : i64} {
  func.func @_pe_kernel(%arg0: i32, %arg1: memref<128x1xf32, #tpu.memory_space<vmem>>, %arg2: memref<1x128xf32, #tpu.memory_space<vmem>>, %arg3: memref<1x128xf32, #tpu.memory_space<vmem>>, %arg4: memref<128x128xf32, #tpu.memory_space<vmem>>) attributes {dimension_semantics = [#tpu.dimension_semantics<parallel>], iteration_bounds = array<i64: 2>, scalar_prefetch = 0 : i64, scratch_operands = 0 : i64, tpu.core_type = #tpu.core_type<tc>, window_params = [{transform_indices = @transform_0, window_bounds = array<i64: 128, 1>}, {pipeline_mode = #tpu.pipeline_mode<synchronous>, transform_indices = @transform_1, window_bounds = array<i64: 1, 128>}, {pipeline_mode = #tpu.pipeline_mode<synchronous>, transform_indices = @transform_2, window_bounds = array<i64: 1, 128>}, {transform_indices = @transform_3, window_bounds = array<i64: 128, 128>}]} {
    %c0 = arith.constant 0 : index
    %c0_0 = arith.constant 0 : index
    %0 = vector.load %arg1[%c0, %c0_0] : memref<128x1xf32, #tpu.memory_space<vmem>>, vector<128x1xf32>
    %c0_1 = arith.constant 0 : index
    %c0_2 = arith.constant 0 : index
    %1 = vector.load %arg2[%c0_1, %c0_2] : memref<1x128xf32, #tpu.memory_space<vmem>>, vector<1x128xf32>
    %2 = vector.broadcast %0 : vector<128x1xf32> to vector<128x128xf32>
    %3 = vector.broadcast %1 : vector<1x128xf32> to vector<128x128xf32>
    %4 = arith.mulf %2, %3 : vector<128x128xf32>
    %c0_3 = arith.constant 0 : index
    %c0_4 = arith.constant 0 : index
    %5 = vector.load %arg3[%c0_3, %c0_4] : memref<1x128xf32, #tpu.memory_space<vmem>>, vector<1x128xf32>
    %6 = vector.broadcast %5 : vector<1x128xf32> to vector<128x128xf32>
    %7 = arith.addf %4, %6 : vector<128x128xf32>
    %8 = math.sin %7 : vector<128x128xf32>
    %c0_5 = arith.constant 0 : index
    %c0_6 = arith.constant 0 : index
    %9 = vector.load %arg4[%c0_5, %c0_6] : memref<128x128xf32, #tpu.memory_space<vmem>>, vector<128x128xf32>
    tpu.vector_store %arg4[%c0_5, %c0_6], %8 {strides = array<i32>} : memref<128x128xf32, #tpu.memory_space<vmem>>, vector<128x128xf32>,
    return
  }
  func.func @transform_0(%arg0: i32) -> (i32, i32) {
    %c0_i32 = arith.constant 0 : i32
    %c0_i32_0 = arith.constant 0 : i32
    return %arg0, %c0_i32 : i32, i32
  }
  func.func @transform_1(%arg0: i32) -> (i32, i32) {
    %c0_i32 = arith.constant 0 : i32
    %c0_i32_0 = arith.constant 0 : i32
    %c0_i32_1 = arith.constant 0 : i32
    return %c0_i32, %c0_i32_0 : i32, i32
  }
  func.func @transform_2(%arg0: i32) -> (i32, i32) {
    %c0_i32 = arith.constant 0 : i32
    %c0_i32_0 = arith.constant 0 : i32
    %c0_i32_1 = arith.constant 0 : i32
    return %c0_i32, %c0_i32_0 : i32, i32
  }
  func.func @transform_3(%arg0: i32) -> (i32, i32) {
    %c0_i32 = arith.constant 0 : i32
    %c0_i32_0 = arith.constant 0 : i32
    return %arg0, %c0_i32 : i32, i32
  }
}

</mosaic_0001>

<bundles_post_ra>
// kernel: tpu_custom_call.1
= control target key start
LH: loop header
LB: loop body
LE: loop exit
PB: predicated region body
PF: predicated region fallthrough
CT: control target
= control target key end

     0   :  { %8 = vsyncpa [#allocation3], 0  ;;  %s3785_s0 = inlined_call_operand.vmem [shape: f32[250,1], index: 0, kind: input, shape index: {}]   ;;  %s3786_s1 = inlined_call_operand.vmem [shape: f32[1,128], index: 1, kind: input, shape index: {}]   ;;  %s3787_s2 = inlined_call_operand.vmem [shape: f32[1,128], index: 2, kind: input, shape index: {}]   ;;  %s3788_s3 = inlined_call_operand.hbm [shape: f32[250,128], index: 3, kind: output, shape index: {}]  }
   0x1   :  { %10 = vsyncpa [#allocation3 + $0x1], 0  ;;  %s2425_s12 = smov 0   ;;  %s2427_s13 = smov 0  }
   0x2   :  { %s2429_s14 = smov 0   ;;  %s2431_s15 = smov 0  }
   0x3 LB: > { %s2446_s16 = sadd.s32 4294967295, %s2393_s15   ;;  %s2070_s17 = sadd.s32 4294967294, %s2393_s15   ;;  %s2393_s15 = sphi %s2431_s15, %s3822_s15   ;;  %s2389_s14 = sphi %s2429_s14, %s3821_s14   ;;  %s2385_s13 = sphi %s2427_s13, %s3820_s13   ;;  %s2381_s12 = sphi %s2425_s12, %s3819_s12  }
   0x4   : > { %s2450_s18 = sadd.s32 1, %s2393_s15   ;;  %s91_s19 = sadd.s32 1, %s2389_s14 }
   0x5   : > { %s88_s20 = ssub.s32 %s2393_s15, %s2450_s18  ;;  %p101_p0 = scmp.ne.s32.totalorder %s2389_s14, %s2385_s13 }
   0x6   : > { %p89_p1 = scmp.eq.s32.totalorder %s88_s20, 0  ;;  %p102_p2 = scmp.eq.s32.totalorder %s2446_s16, 1 }
   0x7   : > { %p107_p3 = scmp.ne.s32.totalorder %s2385_s13, %s2381_s12  ;;  %p108_p4 = scmp.eq.s32.totalorder %s2070_s17, 1 }
   0x8   : > { %s2461_s21 = scalar_select %p89_p1, %s2389_s14, %s91_s19  }
   0x9   : > { %p2463_p5 = por %p102_p2, %p101_p0  ;;  %p2467_p6 = por %p108_p4, %p107_p3 }
   0xa   : > { %p2073_p7 = scmp.ge.s32.totalorder %s2393_s15, 1  ;;  %p141_p8 = scmp.lt.s32.totalorder %s2393_s15, 3 }
   0xc   : > { %p142_p9 = pnand %p2073_p7, %p141_p8 }
   0xd   : > { %s2075_s24 = sshll.u32 (!%p142_p9), %s2446_s16, 4  ;;  %v2395_v0 = vmov (!%p142_p9), 0   ;;  %v2480_v17 = vld [vmem:[%s3786_s1] ss:$0 sm:$0xff] (!%p142_p9)  ;;  %v2396_v55 = vmov (!%p142_p9), 683565275  }
   0xe   : > { %145 = sbr.rel (%p142_p9) target bundleno = 607 (0x25f), region = 32  ;;  %2262 = vset.pattern.permute.xlu1 (!%p142_p9), %v2395_v0  ;;  %2261 = vset.pattern.permute.xlu0 (!%p142_p9), %v2395_v0  ;;  %p166_p10 = scmp.lt.s32.totalorder (!%p142_p9), %s2075_s24, 31  ;;  %v2485_v18 = vld [vmem:[%s3787_s2] ss:$0 sm:$0xff] (!%p142_p9)  ;;  %v2397_v59 = vmov (!%p142_p9), 2475754826  }
   0xf   : > { %v2398_v61 = vmov (!%p142_p9), 2131351028   ;;  %v2399_v63 = vmov (!%p142_p9), 2102212464   ;;  %s162_s6 = sand.u32 (!%p142_p9), 1, %s2385_s13   ;;  %s2148_s26 = sshll.u32 (!%p142_p9), %s2446_s16, 11 }
  0x10   : > { %s2074_s7 = sshll.u32 (!%p142_p9), %s162_s6, 7  ;;  %s3736_s30 = scalar_lea.hbm (!%p142_p9), %s3788_s3, %s2148_s26 }
  0x11   : > { %s2768_s8 = scalar_lea.vmem (!%p142_p9), [#allocation2], %s2074_s7  ;;  %s3744_s16 = scalar_lea.sflag (!%p142_p9), [#allocation3], %s162_s6 }
  0x12   : > { %s2008_s27 = sshll.u32 (!%p142_p9), %s2768_s8, 4  ;;  %s2402_s5 = smov (!%p142_p9), [#allocation2]   ;;  %s3738_s27 = int_to_ptr.vmem [resolvable:$true] %s2008_s27 }
  0x13   : > { %s2331_s4 = scalar_lea.vmem (!%p142_p9), %s3738_s27, 2048  ;;  %s2335_s7 = sshll.u32 (!%p142_p9), %s2402_s5, 4  ;;  %s2336_s7 = int_to_ptr.vmem [resolvable:$false] %s2335_s7 }
  0x14   : > { %p2332_p11 = scmp.ne.s32.totalorder (!%p142_p9), %s3738_s27, %s2331_s4  ;;  %s2337_s9 = scalar_lea.vmem (!%p142_p9), %s2336_s7, 4096 }
  0x15   : > { %s3824_s24 = smov (!%p166_p10, %s2075_s24), 31  ;;  %p2338_p0 = scmp.lt.s32.totalorder %s3738_s27, %s2336_s7 }
  0x16   : > { %s2076_s25 = sshll.u32 %s3824_s24, 3  ;;  %p2333_p12 = pnand %p2332_p11, %p2463_p5 }
  0x17   : > { %s169_s28 = scalar_lea.vmem %s3785_s0, %s2076_s25  ;;  %p2339_p1 = scmp.lt.s32.totalorder %s2337_s9, %s2331_s4 }
  0x18   : > { %v174_v1 = vld [vmem:[%s169_s28 + $0x10] sm:$0xff]  ;;  %v172_v2 = vld [vmem:[%s169_s28] sm:$0xff]  ;;  %v175_v3 = vld [vmem:[%s169_s28 + $0x18] sm:$0xff]  ;;  %p2334_p13 = pneg %p2333_p12 }
  0x19   : > { %201 = vperm.xlu1 %2262, %v174_v1   ;;  %191 = vperm.xlu0 %2261, %v172_v2   ;;  %v173_v4 = vld [vmem:[%s169_s28 + $0x8] sm:$0xff]  ;;  %v176_v6 = vld [vmem:[%s169_s28 + $0x20] sm:$0xff]  ;;  %v179_v7 = vld [vmem:[%s169_s28 + $0x38] sm:$0xff]  ;;  %v2400_v1 = vmov 920167782   ;;  %p2340_p2 = por %p2339_p1, %p2338_p0 }
  0x1a   : > { %v177_v5 = vld [vmem:[%s169_s28 + $0x28] sm:$0xff]  ;;  %v178_v8 = vld [vmem:[%s169_s28 + $0x30] sm:$0xff]  ;;  %v180_v10 = vld [vmem:[%s169_s28 + $0x40] sm:$0xff] }
  0x1b   : > { %v181_v9 = vld [vmem:[%s169_s28 + $0x48] sm:$0xff]  ;;  %v183_v11 = vld [vmem:[%s169_s28 + $0x58] sm:$0xff]  ;;  %v182_v12 = vld [vmem:[%s169_s28 + $0x50] sm:$0xff]  ;;  %p2341_p3 = pnand %p2340_p2, %p2334_p13 }
  0x1c   : > { %v185_v13 = vld [vmem:[%s169_s28 + $0x68] sm:$0xff]  ;;  %v184_v14 = vld [vmem:[%s169_s28 + $0x60] sm:$0xff]  ;;  %v187_v15 = vld [vmem:[%s169_s28 + $0x78] sm:$0xff] }
  0x1d   : > { %206 = vperm.xlu1 %2262, %v175_v3   ;;  %196 = vperm.xlu0 %2261, %v173_v4   ;;  %v186_v16 = vld [vmem:[%s169_s28 + $0x70] sm:$0xff] }
  0x21   : > { %216 = vperm.xlu1 %2262, %v177_v5   ;;  %211 = vperm.xlu0 %2261, %v176_v6  }
  0x25   : > { %226 = vperm.xlu1 %2262, %v179_v7   ;;  %221 = vperm.xlu0 %2261, %v178_v8   ;;  %v2401_v8 = vmov 1326507024  }
  0x29   : > { %236 = vperm.xlu1 %2262, %v181_v9   ;;  %231 = vperm.xlu0 %2261, %v180_v10  }
  0x2d   : > { %246 = vperm.xlu1 %2262, %v183_v11   ;;  %241 = vperm.xlu0 %2261, %v182_v12  }
  0x31   : > { %256 = vperm.xlu1 %2262, %v185_v13   ;;  %251 = vperm.xlu0 %2261, %v184_v14  }
  0x35   : > { %266 = vperm.xlu1 %2262, %v187_v15   ;;  %261 = vperm.xlu0 %2261, %v186_v16  }
  0x98   : > { %v202_v19 = vpop.permute.xlu1 %201  ;;  %v192_v20 = vpop.permute.xlu0 %191 }
  0x99   : > { %v277_v21 = vmul.f32 %v2480_v17, %v202_v19  ;;  %v275_v22 = vmul.f32 %v2480_v17, %v192_v20 }
  0x9b   : > { %v2490_v23 = vadd.f32 %v2485_v18, %v277_v21  ;;  %v2493_v24 = vadd.f32 %v2485_v18, %v275_v22 }
  0x9c   : > { %v207_v25 = vpop.permute.xlu1 %206  ;;  %v197_v43 = vpop.permute.xlu0 %196 }
  0x9d   : > { %v522_v26 = vand.u32 2147483647, %v2490_v23  ;;  %v525_v27 = vand.u32 2139095040, %v2490_v23  ;;  %v314_v28 = vand.u32 2147483647, %v2493_v24  ;;  %v317_v29 = vand.u32 2139095040, %v2493_v24 }
  0x9e   : > { %v278_v31 = vmul.f32 %v2480_v17, %v207_v25  ;;  %v2509_v49 = vmul.f32 %v2480_v17, %v197_v43  ;;  %vm524_vm13 = vcmp.lt.s32.totalorder %v2490_v23, 0  ;;  %vm316_vm14 = vcmp.lt.s32.totalorder %v2493_v24, 0 }
  0x9f   : > { %v526_v30 = vshrl.u32 %v525_v27, 23  ;;  %v529_v32 = vand.u32 8388607, %v522_v26  ;;  %v318_v33 = vshrl.u32 %v317_v29, 23  ;;  %v321_v34 = vand.u32 8388607, %v314_v28 }
  0xa0   : > { %v2505_v36 = vadd.f32 %v2485_v18, %v278_v31 }
  0xa1   : > { %v2087_v35 = vadd.s32 4294967169, %v526_v30  ;;  %v2079_v37 = vadd.s32 4294967169, %v318_v33  ;;  %v530_v39 = vor.u32 8388608, %v529_v32  ;;  %v322_v40 = vor.u32 8388608, %v321_v34 }
  0xa2   : > { %v629_v42 = vand.u32 2139095040, %v2505_v36  ;;  %v626_v53 = vand.u32 2147483647, %v2505_v36 }
  0xa3   : > { %v532_v38 = vadd.s32 1, %v2087_v35  ;;  %v324_v41 = vadd.s32 1, %v2079_v37  ;;  %v2511_v50 = vshll.u32 %v530_v39, 8  ;;  %v2515_v52 = vshll.u32 %v322_v40, 8 }
  0xa4   : > { %v630_v45 = vshrl.u32 %v629_v42, 23 }
  0xa5   : > { %vm533_vm0 = vcmp.gt.s32.totalorder %v532_v38, 0  ;;  %vm325_vm1 = vcmp.gt.s32.totalorder %v324_v41, 0 }
  0xa6   : > { %v534_v44 = vsel %vm533_vm0, %v532_v38, 0  ;;  %v326_v48 = vsel %vm325_vm1, %v324_v41, 0  ;;  %v2519_v58 = vadd.s32 4294967169, %v630_v45  ;;  %vm2627_vm1 = vcmp.le.f32.partialorder %v522_v26, 0.7853982 }
  0xa7   : > { %v535_v46 = vshrl.u32 %v534_v44, 5  ;;  %v536_v47 = vand.u32 31, %v534_v44  ;;  %v2513_v51 = vshrl.u32 %v326_v48, 5  ;;  %v328_v57 = vand.u32 31, %v326_v48 }
  0xa9   : > { %v537_v54 = vsub.s32 32, %v536_v47  ;;  %v539_v56 = vshll.u32 %v2396_v55, %v536_v47  ;;  %v542_v60 = vshll.u32 %v2397_v59, %v536_v47  ;;  %v545_v62 = vshll.u32 %v2398_v61, %v536_v47 }
  0xaa   : > { %v548_v0 = vshll.u32 %v2399_v63, %v536_v47  ;;  %v551_v2 = vshll.u32 %v2400_v1, %v536_v47  ;;  %vm554_vm2 = vcmp.lt.s32.totalorder %v535_v46, 1  ;;  %vm555_vm3 = vcmp.lt.s32.totalorder %v535_v46, 2 }
  0xab   : > { %v540_v3 = vshrl.u32 %v2397_v59, %v537_v54  ;;  %v543_v4 = vshrl.u32 %v2398_v61, %v537_v54  ;;  %v546_v5 = vshrl.u32 %v2399_v63, %v537_v54  ;;  %v538_v6 = vshrl.u32 %v2396_v55, %v537_v54 }
  0xac   : > { %v549_v7 = vshrl.u32 %v2400_v1, %v537_v54  ;;  %v552_v9 = vshrl.u32 %v2401_v8, %v537_v54  ;;  %v329_v13 = vsub.s32 32, %v328_v57  ;;  %vm556_vm4 = vcmp.lt.s32.totalorder %v535_v46, 3 }
  0xad   : > { %v541_v10 = vor.u32 %v540_v3, %v539_v56  ;;  %v544_v11 = vor.u32 %v543_v4, %v542_v60  ;;  %v547_v12 = vor.u32 %v546_v5, %v545_v62  ;;  %vm557_vm5 = vcmp.lt.s32.totalorder %v535_v46, 4 }
  0xae   : > { %v550_v14 = vor.u32 %v549_v7, %v548_v0  ;;  %v553_v15 = vor.u32 %v552_v9, %v551_v2  ;;  %v331_v29 = vshll.u32 %v2396_v55, %v328_v57  ;;  %v332_v32 = vshrl.u32 %v2397_v59, %v329_v13 }
  0xaf   : > { %v558_v16 = vsel %vm554_vm2, %v538_v6, %v541_v10  ;;  %v559_v19 = vsel %vm557_vm5, %v547_v12, 2102212464  ;;  %v562_v20 = vsel %vm554_vm2, %v541_v10, %v544_v11  ;;  %v566_v21 = vsel %vm554_vm2, %v544_v11, %v547_v12 }
  0xb0   : > { %v560_v22 = vsel %vm556_vm4, %v544_v11, %v559_v19  ;;  %v563_v25 = vsel %vm557_vm5, %v550_v14, 920167782  ;;  %v567_v27 = vsel %vm557_vm5, %v553_v15, 1326507024  ;;  %v334_v33 = vshll.u32 %v2397_v59, %v328_v57 }
  0xb1   : > { %v564_v30 = vsel %vm556_vm4, %v547_v12, %v563_v25  ;;  %v568_v31 = vsel %vm556_vm4, %v550_v14, %v567_v27  ;;  %v561_v34 = vsel %vm555_vm3, %v558_v16, %v560_v22  ;;  %v335_v38 = vshrl.u32 %v2398_v61, %v329_v13 }
  0xb2   : > { %v565_v35 = vsel %vm555_vm3, %v562_v20, %v564_v30  ;;  %v569_v37 = vsel %vm555_vm3, %v566_v21, %v568_v31  ;;  %v333_v43 = vor.u32 %v332_v32, %v331_v29  ;;  %v337_v45 = vshll.u32 %v2398_v61, %v328_v57 }
  0xb3   : > { %v2542_v39 = vmul.u32.u64.low %v2511_v50, %v569_v37  ;;  %v2543_v40 = vmul.u32.u64.high %v2511_v50, %v569_v37, %v2542_v39  ;;  %v2546_v41 = vmul.u32.u64.low %v2511_v50, %v565_v35  ;;  %v2547_v42 = vmul.u32.u64.high %v2511_v50, %v565_v35, %v2546_v41 }
  0xb4   : > { %v336_v44 = vor.u32 %v335_v38, %v334_v33  ;;  %v338_v47 = vshrl.u32 %v2399_v63, %v329_v13  ;;  %v330_v48 = vshrl.u32 %v2396_v55, %v329_v13  ;;  %v340_v46 = vshll.u32 %v2399_v63, %v328_v57 }
  0xb5   : > { %v341_v54 = vshrl.u32 %v2400_v1, %v329_v13  ;;  %v344_v56 = vshrl.u32 %v2401_v8, %v329_v13  ;;  %v577_v60 = vmul.u32 %v2511_v50, %v561_v34  ;;  %v343_v0 = vshll.u32 %v2400_v1, %v328_v57 }
  0xb6   : > { %v339_v62 = vor.u32 %v338_v47, %v337_v45  ;;  %vm346_vm6 = vcmp.lt.s32.totalorder %v2513_v51, 1  ;;  %vm579_vm7 = vc.u32 %v2543_v40, %v2546_v41  ;;  %v580_v2 = vadd.s32 1, %v2547_v42 }
  0xb7   : > { %v342_v3 = vor.u32 %v341_v54, %v340_v46  ;;  %vm347_vm8 = vcmp.lt.s32.totalorder %v2513_v51, 2  ;;  %v345_v4 = vor.u32 %v344_v56, %v343_v0  ;;  %vm348_vm9 = vcmp.lt.s32.totalorder %v2513_v51, 3 }
  0xb8   : > { %vm349_vm10 = vcmp.lt.s32.totalorder %v2513_v51, 4  ;;  %v354_v5 = vsel %vm346_vm6, %v333_v43, %v336_v44  ;;  %v581_v50 = vsel %vm579_vm7, %v580_v2, %v2547_v42  ;;  %v358_v57 = vsel %vm346_vm6, %v336_v44, %v339_v62  ;;  %v217_v42 = vpop.permute.xlu1 %216 }
  0xb9   : > { %v351_v6 = vsel %vm349_vm10, %v339_v62, 2102212464  ;;  %v355_v7 = vsel %vm349_vm10, %v342_v3, 920167782  ;;  %v582_v9 = vadd.s32 %v581_v50, %v577_v60  ;;  %v350_v10 = vsel %vm346_vm6, %v330_v48, %v333_v43 }
  0xba   : > { %v356_v11 = vsel %vm348_vm9, %v339_v62, %v355_v7  ;;  %v359_v12 = vsel %vm349_vm10, %v345_v4, 1326507024  ;;  %v352_v13 = vsel %vm348_vm9, %v336_v44, %v351_v6  ;;  %v636_v16 = vadd.s32 1, %v2519_v58 }
  0xbb   : > { %v357_v14 = vsel %vm347_vm8, %v354_v5, %v356_v11  ;;  %v360_v15 = vsel %vm348_vm9, %v342_v3, %v359_v12  ;;  %v583_v19 = vadd.s32 536870912, %v582_v9  ;;  %v633_v29 = vand.u32 8388607, %v626_v53 }
  0xbc   : > { %v361_v20 = vsel %vm347_vm8, %v358_v57, %v360_v15  ;;  %v2570_v21 = vmul.u32.u64.low %v2515_v52, %v357_v14  ;;  %v2571_v22 = vmul.u32.u64.high %v2515_v52, %v357_v14, %v2570_v21  ;;  %vm637_vm11 = vcmp.gt.s32.totalorder %v636_v16, 0 }
  0xbd   : > { %v2575_v25 = vmul.u32.u64.low %v2515_v52, %v361_v20  ;;  %v2576_v27 = vmul.u32.u64.high %v2515_v52, %v361_v20, %v2575_v25  ;;  %v584_v30 = vshrl.u32 %v583_v19, 30  ;;  %v353_v58 = vsel %vm347_vm8, %v350_v10, %v352_v13 }
  0xbe   : > { %v638_v31 = vsel %vm637_vm11, %v636_v16, 0  ;;  %v372_v34 = vadd.s32 1, %v2571_v22  ;;  %v2585_v35 = vadd.f32 %v2485_v18, %v2509_v49  ;;  %v369_v37 = vmul.u32 %v2515_v52, %v353_v58 }
  0xbf   : > { %v640_v32 = vand.u32 31, %v638_v31  ;;  %v585_v33 = vshll.u32 %v584_v30, 30  ;;  %vm371_vm12 = vc.u32 %v2576_v27, %v2570_v21  ;;  %v634_v38 = vor.u32 8388608, %v633_v29 }
  0xc0   : > { %v373_v51 = vsel %vm371_vm12, %v372_v34, %v2571_v22  ;;  %v578_v45 = vadd.s32 %v2546_v41, %v2543_v40  ;;  %v418_v47 = vand.u32 2147483647, %v2585_v35  ;;  %v2598_v52 = vmul.f32 %v2480_v17, %v217_v42 }
  0xc1   : > { %v641_v39 = vsub.s32 32, %v640_v32  ;;  %v2590_v43 = vsub.s32 %v582_v9, %v585_v33  ;;  %v374_v44 = vadd.s32 %v373_v51, %v369_v37  ;;  %v2601_v54 = vshll.u32 %v634_v38, 8 }
  0xc2   : > { %v421_v56 = vand.u32 2139095040, %v2585_v35  ;;  %v2605_v62 = vshrl.u32 %v638_v31, 5  ;;  %v608_v0 = vsub.s32 4, %v584_v30  ;;  %v643_v3 = vshll.u32 %v2396_v55, %v640_v32 }
  0xc3   : > { %v588_v49 = vsub.s32 0, %v2590_v43  ;;  %v375_v48 = vadd.s32 536870912, %v374_v44  ;;  %v644_v46 = vshrl.u32 %v2397_v59, %v641_v39  ;;  %v647_v40 = vshrl.u32 %v2398_v61, %v641_v39 }
  0xc4   : > { %v650_v41 = vshrl.u32 %v2399_v63, %v641_v39  ;;  %v653_v4 = vshrl.u32 %v2400_v1, %v641_v39  ;;  %v646_v50 = vshll.u32 %v2397_v59, %v640_v32  ;;  %v649_v6 = vshll.u32 %v2398_v61, %v640_v32 }
  0xc5   : > { %v2088_v60 = vmin.u32 %v588_v49, %v2590_v43  ;;  %v376_v2 = vshrl.u32 %v375_v48, 30  ;;  %v656_v7 = vshrl.u32 %v2401_v8, %v641_v39  ;;  %v645_v9 = vor.u32 %v644_v46, %v643_v3 }
  0xc6   : > { %v652_v10 = vshll.u32 %v2399_v63, %v640_v32  ;;  %v422_v11 = vshrl.u32 %v421_v56, 23  ;;  %v648_v13 = vor.u32 %v647_v40, %v646_v50  ;;  %v651_v14 = vor.u32 %v650_v41, %v649_v6 }
  0xc7   : > { %v590_v5 = vclz %v2088_v60  ;;  %v377_v57 = vshll.u32 %v376_v2, 30  ;;  %v655_v15 = vshll.u32 %v2400_v1, %v640_v32  ;;  %v2618_v16 = vsel %vm524_vm13, %v608_v0, %v584_v30 }
  0xc8   : > { %v642_v20 = vshrl.u32 %v2396_v55, %v641_v39  ;;  %v654_v22 = vor.u32 %v653_v4, %v652_v10  ;;  %v400_v25 = vsub.s32 4, %v376_v2  ;;  %vm658_vm0 = vcmp.lt.s32.totalorder %v2605_v62, 1 }
  0xc9   : > { %v2089_v12 = vadd.s32 4294967294, %v590_v5  ;;  %v2621_v19 = vsub.s32 %v374_v44, %v377_v57  ;;  %v657_v29 = vor.u32 %v656_v7, %v655_v15  ;;  %vm660_vm2 = vcmp.lt.s32.totalorder %v2605_v62, 3 }
  0xca   : > { %vm661_vm3 = vcmp.lt.s32.totalorder %v2605_v62, 4  ;;  %vm2636_vm4 = vcmp.le.f32.partialorder %v314_v28, 0.7853982  ;;  %v666_v26 = vsel %vm658_vm0, %v645_v9, %v648_v13  ;;  %v670_v51 = vsel %vm658_vm0, %v648_v13, %v651_v14 }
  0xcb   : > { %vm2090_vm15 = vcmp.lt.s32.totalorder %v2089_v12, 0  ;;  %v380_v31 = vsub.s32 0, %v2621_v19  ;;  %v663_v37 = vsel %vm661_vm3, %v651_v14, 2102212464  ;;  %v667_v42 = vsel %vm661_vm3, %v654_v22, 920167782 }
  0xcc   : > { %v593_v30 = vsel %vm2090_vm15, 0, %v2089_v12  ;;  %v668_v28 = vsel %vm660_vm2, %v651_v14, %v667_v42  ;;  %v671_v48 = vsel %vm661_vm3, %v657_v29, 1326507024  ;;  %vm659_vm5 = vcmp.lt.s32.totalorder %v2605_v62, 2 }
  0xcd   : > { %v594_v32 = vsub.s32 32, %v593_v30  ;;  %v598_v33 = vsub.s32 4294967266, %v593_v30  ;;  %v595_v38 = vshll.u32 %v2590_v43, %v593_v30  ;;  %v2080_v39 = vmin.u32 %v380_v31, %v2621_v19 }
  0xce   : > { %v662_v56 = vsel %vm658_vm0, %v642_v20, %v645_v9  ;;  %v664_v43 = vsel %vm660_vm2, %v648_v13, %v663_v37  ;;  %v669_v41 = vsel %vm659_vm5, %v666_v26, %v668_v28  ;;  %v401_v6 = vsel %vm316_vm14, %v400_v25, %v376_v2  ;;  %v212_v26 = vpop.permute.xlu0 %211 }
  0xcf   : > { %v596_v44 = vshrl.u32 %v578_v45, %v594_v32  ;;  %v599_v49 = vadd.s32 127, %v598_v33  ;;  %v382_v46 = vclz %v2080_v39  ;;  %v672_v45 = vsel %vm660_vm2, %v654_v22, %v671_v48 }
  0xd0   : > { %v673_v3 = vsel %vm659_vm5, %v670_v51, %v672_v45  ;;  %v2656_v4 = vmul.u32.u64.low %v2601_v54, %v669_v41  ;;  %v2657_v5 = vmul.u32.u64.high %v2601_v54, %v669_v41, %v2656_v4  ;;  %v370_v9 = vadd.s32 %v2570_v21, %v2576_v27 }
  0xd1   : > { %v597_v60 = vor.u32 %v596_v44, %v595_v38  ;;  %v600_v40 = vshll.u32 %v599_v49, 23  ;;  %v2081_v0 = vadd.s32 4294967294, %v382_v46  ;;  %v665_v62 = vsel %vm659_vm5, %v662_v56, %v664_v43 }
  0xd2   : > { %v2662_v7 = vmul.u32.u64.low %v2601_v54, %v673_v3  ;;  %v2663_v57 = vmul.u32.u64.high %v2601_v54, %v673_v3, %v2662_v7  ;;  %v2083_v10 = vadd.s32 4294967169, %v422_v11  ;;  %v611_v14 = vsel %vm2627_vm1, 0, %v2618_v16 }
  0xd3   : > { %v601_v50 = vor.u32 4788187, %v600_v40  ;;  %vm2082_vm6 = vcmp.lt.s32.totalorder %v2081_v0, 0  ;;  %v604_v13 = vcvt.s32.f32 %v597_v60  ;;  %v403_v2 = vsel %vm2636_vm4, 0, %v401_v6 }
  0xd4   : > { %v385_v15 = vsel %vm2082_vm6, 0, %v2081_v0  ;;  %v684_v25 = vadd.s32 1, %v2657_v5  ;;  %v681_v21 = vmul.u32 %v2601_v54, %v665_v62  ;;  %vm683_vm7 = vc.u32 %v2663_v57, %v2656_v4 }
  0xd5   : > { %v602_v12 = vand.u32 2147483647, %v601_v50  ;;  %v386_v20 = vsub.s32 32, %v385_v15  ;;  %v390_v22 = vsub.s32 4294967266, %v385_v15  ;;  %v428_v27 = vadd.s32 1, %v2083_v10 }
  0xd6   : > { %v387_v11 = vshll.u32 %v2621_v19, %v385_v15  ;;  %v685_v16 = vsel %vm683_vm7, %v684_v25, %v2657_v5  ;;  %v615_v33 = vadd.s32 3, %v611_v14  ;;  %v407_v42 = vadd.s32 3, %v403_v2 }
  0xd7   : > { %v605_v29 = vmul.f32 %v604_v13, %v602_v12  ;;  %v388_v30 = vshrl.u32 %v370_v9, %v386_v20  ;;  %v391_v31 = vadd.s32 127, %v390_v22  ;;  %v686_v37 = vadd.s32 %v685_v16, %v681_v21 }
  0xd8   : > { %vm429_vm8 = vcmp.gt.s32.totalorder %v428_v27, 0  ;;  %v425_v19 = vand.u32 8388607, %v418_v47  ;;  %v2685_v46 = vmul.f32 %v2480_v17, %v212_v26  ;;  %v2687_v56 = vand.u32 3, %v615_v33 }
  0xd9   : > { %v606_v32 = vxor.u32 2147483648, %v605_v29  ;;  %v389_v38 = vor.u32 %v388_v30, %v387_v11  ;;  %v392_v39 = vshll.u32 %v391_v31, 23  ;;  %v430_v51 = vsel %vm429_vm8, %v428_v27, 0 }
  0xda   : > { %v687_v44 = vadd.s32 536870912, %v686_v37  ;;  %v432_v49 = vand.u32 31, %v430_v51  ;;  %vm628_vm9 = vcmp.lt.s32.totalorder %v2505_v36, 0  ;;  %v2690_v45 = vand.u32 3, %v407_v42 }
  0xdb   : > { %v607_v54 = vsel %vm524_vm13, %v606_v32, %v605_v29  ;;  %v393_v48 = vor.u32 4788187, %v392_v39  ;;  %v396_v41 = vcvt.s32.f32 %v389_v38  ;;  %v426_v3 = vor.u32 8388608, %v425_v19 }
  0xdc   : > { %v610_v28 = vsel %vm2627_vm1, %v2490_v23, %v607_v54  ;;  %v688_v43 = vshrl.u32 %v687_v44, 30  ;;  %v433_v60 = vsub.s32 32, %v432_v49  ;;  %v2695_v5 = vadd.f32 %v2485_v18, %v2598_v52 }
  0xdd   : > { %2263 = vcosq.f32 %v610_v28  ;;  %v394_v40 = vand.u32 2147483647, %v393_v48  ;;  %v2698_v6 = vadd.s32 %v2656_v4, %v2663_v57  ;;  %vm621_vm10 = vcmp.eq.s32.totalorder %v2687_v56, 2 }
  0xde   : > { %2265 = vsinq.f32 %v610_v28  ;;  %v689_v0 = vshll.u32 %v688_v43, 30  ;;  %v436_v58 = vshrl.u32 %v2397_v59, %v433_v60  ;;  %v439_v7 = vshrl.u32 %v2398_v61, %v433_v60 }
  0xdf   : > { %v397_v50 = vmul.f32 %v396_v41, %v394_v40  ;;  %v442_v9 = vshrl.u32 %v2399_v63, %v433_v60  ;;  %v2705_v10 = vshrl.u32 %v430_v51, 5  ;;  %v435_v12 = vshll.u32 %v2396_v55, %v432_v49 }
  0xe0   : > { %v2703_v62 = vsub.s32 %v686_v37, %v689_v0  ;;  %v445_v13 = vshrl.u32 %v2400_v1, %v433_v60  ;;  %vm618_vm11 = vcmp.eq.s32.totalorder %v2687_v56, 0  ;;  %v712_v4 = vsub.s32 4, %v688_v43 }
  0xe1   : > { %v398_v52 = vxor.u32 2147483648, %v397_v50  ;;  %v438_v57 = vshll.u32 %v2397_v59, %v432_v49  ;;  %v441_v14 = vshll.u32 %v2398_v61, %v432_v49  ;;  %vm617_vm12 = vcmp.lt.s32.totalorder %v2687_v56, 2 }
  0xe2   : > { %v692_v15 = vsub.s32 0, %v2703_v62  ;;  %v437_v20 = vor.u32 %v436_v58, %v435_v12  ;;  %v444_v22 = vshll.u32 %v2399_v63, %v432_v49  ;;  %v2715_v2 = vshll.u32 %v426_v3, 8 }
  0xe3   : > { %vm614_vm13 = vweird.f32 %v2490_v23  ;;  %v399_v25 = vsel %vm316_vm14, %v398_v52, %v397_v50  ;;  %v440_v29 = vor.u32 %v439_v7, %v438_v57  ;;  %v443_v21 = vor.u32 %v442_v9, %v441_v14 }
  0xe4   : > { %v448_v27 = vshrl.u32 %v2401_v8, %v433_v60  ;;  %v402_v11 = vsel %vm2636_vm4, %v2493_v24, %v399_v25  ;;  %v2092_v30 = vmin.u32 %v692_v15, %v2703_v62  ;;  %v446_v31 = vor.u32 %v445_v13, %v444_v22 }
  0xe5   : > { %v447_v16 = vshll.u32 %v2400_v1, %v432_v49  ;;  %2267 = vcosq.f32 %v402_v11  ;;  %v2729_v32 = vsel %vm628_vm9, %v712_v4, %v688_v43  ;;  %v434_v33 = vshrl.u32 %v2396_v55, %v433_v60 }
  0xe6   : > { %vm450_vm14 = vcmp.lt.s32.totalorder %v2705_v10, 1  ;;  %2269 = vsinq.f32 %v402_v11  ;;  %vm2735_vm15 = vcmp.le.f32.partialorder %v626_v53, 0.7853982  ;;  %v694_v26 = vclz %v2092_v30 }
  0xe7   : > { %v2264_v37 = vpop.eup %2263  ;;  %v449_v38 = vor.u32 %v448_v27, %v447_v16  ;;  %vm451_vm0 = vcmp.lt.s32.totalorder %v2705_v10, 2  ;;  %vm452_vm1 = vcmp.lt.s32.totalorder %v2705_v10, 3  ;;  %vm453_vm2 = vcmp.lt.s32.totalorder %v2705_v10, 4 }
  0xe8   : > { %v2266_v39 = vpop.eup %2265  ;;  %v622_v42 = vxor.u32 2147483648, %v2264_v37  ;;  %v458_v51 = vsel %vm450_vm14, %v437_v20, %v440_v29  ;;  %v2093_v53 = vadd.s32 4294967294, %v694_v26  ;;  %v455_v44 = vsel %vm453_vm2, %v443_v21, 2102212464 }
  0xe9   : > { %v619_v54 = vxor.u32 2147483648, %v2266_v39  ;;  %v459_v19 = vsel %vm453_vm2, %v446_v31, 920167782  ;;  %v454_v28 = vsel %vm450_vm14, %v434_v33, %v437_v20  ;;  %v462_v43 = vsel %vm450_vm14, %v440_v29, %v443_v21 }
  0xea   : > { %v623_v49 = vsel %vm621_vm10, %v622_v42, %v2266_v39  ;;  %v460_v48 = vsel %vm452_vm1, %v443_v21, %v459_v19  ;;  %vm2094_vm3 = vcmp.lt.s32.totalorder %v2093_v53, 0  ;;  %v463_v41 = vsel %vm453_vm2, %v449_v38, 1326507024 }
  0xeb   : > { %v620_v60 = vsel %vm618_vm11, %v2264_v37, %v619_v54  ;;  %v461_v40 = vsel %vm451_vm0, %v458_v51, %v460_v48  ;;  %v697_v3 = vsel %vm2094_vm3, 0, %v2093_v53  ;;  %v456_v58 = vsel %vm452_vm1, %v440_v29, %v455_v44 }
  0xec   : > { %v624_v0 = vsel %vm617_vm12, %v620_v60, %v623_v49  ;;  %v464_v50 = vsel %vm452_vm1, %v446_v31, %v463_v41  ;;  %vm406_vm4 = vweird.f32 %v2493_v24  ;;  %v698_v9 = vsub.s32 32, %v697_v3 }
  0xed   : > { %v625_v7 = vsel %vm614_vm13, nan, %v624_v0  ;;  %v699_v12 = vshll.u32 %v2703_v62, %v697_v3  ;;  %v702_v13 = vsub.s32 4294967266, %v697_v3  ;;  %v465_v56 = vsel %vm451_vm0, %v462_v43, %v464_v50 }
  0xee   : > { %1980 = vst [vmem:[%s2768_s8 + $0x10] sm:$0xff] %v625_v7  ;;  %v2774_v52 = vmul.u32.u64.low %v2715_v2, %v461_v40  ;;  %v2775_v4 = vmul.u32.u64.high %v2715_v2, %v461_v40, %v2774_v52  ;;  %v837_v23 = vand.u32 2139095040, %v2695_v5  ;;  %v700_v57 = vshrl.u32 %v2698_v6, %v698_v9 }
  0xef   : > { %v703_v14 = vadd.s32 127, %v702_v13  ;;  %v2781_v62 = vmul.u32.u64.low %v2715_v2, %v465_v56  ;;  %v2782_v15 = vmul.u32.u64.high %v2715_v2, %v465_v56, %v2781_v62  ;;  %v2268_v20 = vpop.eup %2267  ;;  %vm409_vm5 = vcmp.lt.s32.totalorder %v2690_v45, 2 }
  0xf0   : > { %vm413_vm6 = vcmp.eq.s32.totalorder %v2690_v45, 2  ;;  %v715_v22 = vsel %vm2735_vm15, 0, %v2729_v32  ;;  %v838_v25 = vshrl.u32 %v837_v23, 23  ;;  %v2270_v29 = vpop.eup %2269  ;;  %v414_v21 = vxor.u32 2147483648, %v2268_v20 }
  0xf1   : > { %v701_v27 = vor.u32 %v700_v57, %v699_v12  ;;  %v704_v11 = vshll.u32 %v703_v14, 23  ;;  %v457_v6 = vsel %vm451_vm0, %v454_v28, %v456_v58  ;;  %v411_v30 = vxor.u32 2147483648, %v2270_v29 }
  0xf2   : > { %v476_v31 = vadd.s32 1, %v2775_v4  ;;  %v834_v16 = vand.u32 2147483647, %v2695_v5  ;;  %v2099_v33 = vadd.s32 4294967169, %v838_v25  ;;  %vm410_vm7 = vcmp.eq.s32.totalorder %v2690_v45, 0 }
  0xf3   : > { %v415_v37 = vsel %vm413_vm6, %v414_v21, %v2270_v29  ;;  %v705_v26 = vor.u32 4788187, %v704_v11  ;;  %v719_v32 = vadd.s32 3, %v715_v22  ;;  %v412_v38 = vsel %vm410_vm7, %v2268_v20, %v411_v30 }
  0xf4   : > { %v473_v39 = vmul.u32 %v2715_v2, %v457_v6  ;;  %vm475_vm8 = vc.u32 %v2782_v15, %v2774_v52  ;;  %v844_v10 = vadd.s32 1, %v2099_v33  ;;  %v416_v42 = vsel %vm409_vm5, %v412_v38, %v415_v37 }
  0xf5   : > { %v706_v51 = vand.u32 2147483647, %v705_v26  ;;  %v708_v54 = vcvt.s32.f32 %v701_v27  ;;  %v477_v53 = vsel %vm475_vm8, %v476_v31, %v2775_v4  ;;  %v417_v44 = vsel %vm406_vm4, nan, %v416_v42 }
  0xf6   : > { %v478_v19 = vadd.s32 %v477_v53, %v473_v39  ;;  %v841_v49 = vand.u32 8388607, %v834_v16  ;;  %vm845_vm10 = vcmp.gt.s32.totalorder %v844_v10, 0  ;;  %1978 = vst [vmem:[%s2768_s8] sm:$0xff] %v417_v44  ;;  %v2807_v48 = vadd.f32 %v2485_v18, %v2685_v46 }
  0xf7   : > { %v709_v2 = vmul.f32 %v708_v54, %v706_v51  ;;  %v846_v28 = vsel %vm845_vm10, %v844_v10, 0  ;;  %v2809_v40 = vand.u32 3, %v719_v32  ;;  %v474_v11 = vadd.s32 %v2774_v52, %v2782_v15 }
  0xf8   : > { %v479_v45 = vadd.s32 536870912, %v478_v19  ;;  %v848_v43 = vand.u32 31, %v846_v28  ;;  %v842_v24 = vor.u32 8388608, %v841_v49  ;;  %v2815_v58 = vshrl.u32 %v846_v28, 5 }
  0xf9   : > { %v710_v60 = vxor.u32 2147483648, %v709_v2  ;;  %v733_v7 = vand.u32 2139095040, %v2807_v48  ;;  %v730_v30 = vand.u32 2147483647, %v2807_v48  ;;  %vm722_vm11 = vcmp.eq.s32.totalorder %v2809_v40, 0 }
  0xfa   : > { %v2811_v41 = vshrl.u32 %v479_v45, 30  ;;  %v849_v0 = vsub.s32 32, %v848_v43  ;;  %v851_v50 = vshll.u32 %v2396_v55, %v848_v43  ;;  %v854_v12 = vshll.u32 %v2397_v59, %v848_v43 }
  0xfb   : > { %v711_v3 = vsel %vm628_vm9, %v710_v60, %v709_v2  ;;  %v857_v13 = vshll.u32 %v2398_v61, %v848_v43  ;;  %v860_v14 = vshll.u32 %v2399_v63, %v848_v43  ;;  %v863_v22 = vshll.u32 %v2400_v1, %v848_v43 }
  0xfc   : > { %v714_v46 = vsel %vm2735_vm15, %v2505_v36, %v711_v3  ;;  %v481_v9 = vshll.u32 %v2811_v41, 30  ;;  %v852_v56 = vshrl.u32 %v2397_v59, %v849_v0  ;;  %v855_v4 = vshrl.u32 %v2398_v61, %v849_v0 }
  0xfd   : > { %2271 = vcosq.f32 %v714_v46  ;;  %v858_v23 = vshrl.u32 %v2399_v63, %v849_v0  ;;  %v861_v34 = vshrl.u32 %v2400_v1, %v849_v0  ;;  %v864_v27 = vshrl.u32 %v2401_v8, %v849_v0 }
  0xfe   : > { %2273 = vsinq.f32 %v714_v46  ;;  %v2828_v57 = vsub.s32 %v478_v19, %v481_v9  ;;  %v853_v62 = vor.u32 %v852_v56, %v851_v50  ;;  %v856_v20 = vor.u32 %v855_v4, %v854_v12 }
  0xff   : > { %v859_v29 = vor.u32 %v858_v23, %v857_v13  ;;  %v862_v21 = vor.u32 %v861_v34, %v860_v14  ;;  %vm725_vm9 = vcmp.eq.s32.totalorder %v2809_v40, 2  ;;  %v2838_v6 = vshll.u32 %v842_v24, 8 }
 0x100   : > { %v484_v25 = vsub.s32 0, %v2828_v57  ;;  %v734_v31 = vshrl.u32 %v733_v7, 23  ;;  %vm420_vm12 = vcmp.lt.s32.totalorder %v2585_v35, 0  ;;  %v865_v37 = vor.u32 %v864_v27, %v863_v22 }
 0x101   : > { %vm866_vm13 = vcmp.lt.s32.totalorder %v2815_v58, 1  ;;  %vm869_vm14 = vcmp.lt.s32.totalorder %v2815_v58, 4  ;;  %vm721_vm15 = vcmp.lt.s32.totalorder %v2809_v40, 2  ;;  %v504_v52 = vsub.s32 4, %v2811_v41 }
 0x102   : > { %v2084_v33 = vmin.u32 %v484_v25, %v2828_v57  ;;  %v850_v15 = vshrl.u32 %v2396_v55, %v849_v0  ;;  %v874_v26 = vsel %vm866_vm13, %v853_v62, %v856_v20  ;;  %v875_v32 = vsel %vm869_vm14, %v862_v21, 920167782 }
 0x103   : > { %vm718_vm0 = vweird.f32 %v2505_v36  ;;  %vm868_vm1 = vcmp.lt.s32.totalorder %v2815_v58, 3  ;;  %v871_v39 = vsel %vm869_vm14, %v859_v29, 2102212464  ;;  %v878_v10 = vsel %vm866_vm13, %v856_v20, %v859_v29 }
 0x104   : > { %v486_v38 = vclz %v2084_v33  ;;  %vm867_vm2 = vcmp.lt.s32.totalorder %v2815_v58, 2  ;;  %v876_v42 = vsel %vm868_vm1, %v859_v29, %v875_v32  ;;  %v879_v51 = vsel %vm869_vm14, %v865_v37, 1326507024 }
 0x105   : > { %v2095_v54 = vadd.s32 4294967169, %v734_v31  ;;  %v870_v44 = vsel %vm866_vm13, %v850_v15, %v853_v62  ;;  %v877_v19 = vsel %vm867_vm2, %v874_v26, %v876_v42  ;;  %v880_v49 = vsel %vm868_vm1, %v862_v21, %v879_v51 }
 0x106   : > { %v2085_v53 = vadd.s32 4294967294, %v486_v38  ;;  %v872_v28 = vsel %vm868_vm1, %v856_v20, %v871_v39  ;;  %v881_v45 = vsel %vm867_vm2, %v878_v10, %v880_v49  ;;  %v2873_v9 = vand.u32 8388607, %v730_v30 }
 0x107   : > { %v2272_v2 = vpop.eup %2271  ;;  %v2863_v43 = vmul.u32.u64.low %v2838_v6, %v877_v19  ;;  %v2864_v60 = vmul.u32.u64.high %v2838_v6, %v877_v19, %v2863_v43  ;;  %v2868_v3 = vmul.u32.u64.low %v2838_v6, %v881_v45  ;;  %v2869_v50 = vmul.u32.u64.high %v2838_v6, %v881_v45, %v2868_v3 }
 0x108   : > { %v2274_v24 = vpop.eup %2273  ;;  %v726_v0 = vxor.u32 2147483648, %v2272_v2  ;;  %vm2086_vm3 = vcmp.lt.s32.totalorder %v2085_v53, 0  ;;  %v740_v12 = vadd.s32 1, %v2095_v54  ;;  %v873_v23 = vsel %vm867_vm2, %v870_v44, %v872_v28  ;;  %v222_v54 = vpop.permute.xlu0 %221 }
 0x109   : > { %v723_v7 = vxor.u32 2147483648, %v2274_v24  ;;  %v489_v46 = vsel %vm2086_vm3, 0, %v2085_v53  ;;  %v505_v34 = vsel %vm420_vm12, %v504_v52, %v2811_v41  ;;  %v892_v62 = vadd.s32 1, %v2864_v60  ;;  %v227_v41 = vpop.permute.xlu1 %226 }
 0x10a   : > { %v727_v13 = vsel %vm725_vm9, %v726_v0, %v2274_v24  ;;  %v490_v56 = vsub.s32 32, %v489_v46  ;;  %v494_v4 = vsub.s32 4294967266, %v489_v46  ;;  %vm741_vm4 = vcmp.gt.s32.totalorder %v740_v12, 0 }
 0x10b   : > { %v724_v14 = vsel %vm722_vm11, %v2272_v2, %v723_v7  ;;  %v491_v22 = vshll.u32 %v2828_v57, %v489_v46  ;;  %v889_v21 = vmul.u32 %v2838_v6, %v873_v23  ;;  %vm891_vm5 = vc.u32 %v2869_v50, %v2863_v43 }
 0x10c   : > { %v728_v20 = vsel %vm721_vm15, %v724_v14, %v727_v13  ;;  %v492_v25 = vshrl.u32 %v474_v11, %v490_v56  ;;  %v495_v29 = vadd.s32 127, %v494_v4  ;;  %v742_v27 = vsel %vm741_vm4, %v740_v12, 0 }
 0x10d   : > { %v729_v58 = vsel %vm718_vm0, nan, %v728_v20  ;;  %v893_v40 = vsel %vm891_vm5, %v892_v62, %v2864_v60  ;;  %vm2897_vm6 = vcmp.le.f32.partialorder %v418_v47, 0.7853982  ;;  %v744_v11 = vand.u32 31, %v742_v27 }
 0x10e   : > { %1981 = vst [vmem:[%s2768_s8 + $0x18] sm:$0xff] %v729_v58  ;;  %v493_v31 = vor.u32 %v492_v25, %v491_v22  ;;  %v496_v33 = vshll.u32 %v495_v29, 23  ;;  %v894_v36 = vadd.s32 %v893_v40, %v889_v21  ;;  %v507_v6 = vsel %vm2897_vm6, 0, %v505_v34 }
 0x10f   : > { %v738_v52 = vor.u32 8388608, %v2873_v9  ;;  %v282_v15 = vmul.f32 %v2480_v17, %v227_v41  ;;  %v743_v38 = vshrl.u32 %v742_v27, 5  ;;  %v745_v39 = vsub.s32 32, %v744_v11 }
 0x110   : > { %v497_v37 = vor.u32 4788187, %v496_v33  ;;  %v500_v26 = vcvt.s32.f32 %v493_v31  ;;  %v895_v32 = vadd.s32 536870912, %v894_v36  ;;  %v747_v47 = vshll.u32 %v2396_v55, %v744_v11 }
 0x111   : > { %v750_v42 = vshll.u32 %v2397_v59, %v744_v11  ;;  %v753_v51 = vshll.u32 %v2398_v61, %v744_v11  ;;  %v748_v44 = vshrl.u32 %v2397_v59, %v745_v39  ;;  %v751_v19 = vshrl.u32 %v2398_v61, %v745_v39 }
 0x112   : > { %v498_v10 = vand.u32 2147483647, %v497_v37  ;;  %v896_v53 = vshrl.u32 %v895_v32, 30  ;;  %v756_v49 = vshll.u32 %v2399_v63, %v744_v11  ;;  %v754_v28 = vshrl.u32 %v2399_v63, %v745_v39 }
 0x113   : > { %v757_v45 = vshrl.u32 %v2400_v1, %v745_v39  ;;  %v760_v60 = vshrl.u32 %v2401_v8, %v745_v39  ;;  %v749_v0 = vor.u32 %v748_v44, %v747_v47  ;;  %v759_v3 = vshll.u32 %v2400_v1, %v744_v11 }
 0x114   : > { %v501_v2 = vmul.f32 %v500_v26, %v498_v10  ;;  %v897_v24 = vshll.u32 %v896_v53, 30  ;;  %v2916_v7 = vmul.f32 %v2480_v17, %v222_v54  ;;  %vm836_vm7 = vcmp.lt.s32.totalorder %v2695_v5, 0 }
 0x115   : > { %v752_v9 = vor.u32 %v751_v19, %v750_v42  ;;  %v755_v12 = vor.u32 %v754_v28, %v753_v51  ;;  %v758_v13 = vor.u32 %v757_v45, %v756_v49  ;;  %v511_v56 = vadd.s32 3, %v507_v6 }
 0x116   : > { %v502_v46 = vxor.u32 2147483648, %v501_v2  ;;  %v2919_v4 = vsub.s32 %v894_v36, %v897_v24  ;;  %vm762_vm8 = vcmp.lt.s32.totalorder %v743_v38, 1  ;;  %v2922_v23 = vadd.f32 %v2485_v18, %v282_v15 }
 0x117   : > { %v746_v34 = vshrl.u32 %v2396_v55, %v745_v39  ;;  %v761_v17 = vor.u32 %v760_v60, %v759_v3  ;;  %vm763_vm10 = vcmp.lt.s32.totalorder %v743_v38, 2  ;;  %vm764_vm9 = vcmp.lt.s32.totalorder %v743_v38, 3 }
 0x118   : > { %v503_v14 = vsel %vm420_vm12, %v502_v46, %v501_v2  ;;  %v900_v20 = vsub.s32 0, %v2919_v4  ;;  %vm765_vm11 = vcmp.lt.s32.totalorder %v743_v38, 4  ;;  %vm2933_vm13 = vcmp.le.f32.partialorder %v834_v16, 0.7853982 }
 0x119   : > { %v506_v62 = vsel %vm2897_vm6, %v2585_v35, %v503_v14  ;;  %v767_v22 = vsel %vm765_vm11, %v755_v12, 2102212464  ;;  %v770_v25 = vsel %vm762_vm8, %v749_v0, %v752_v9  ;;  %v771_v29 = vsel %vm765_vm11, %v758_v13, 920167782 }
 0x11a   : > { %2275 = vcosq.f32 %v506_v62  ;;  %v2100_v58 = vmin.u32 %v900_v20, %v2919_v4  ;;  %v920_v21 = vsub.s32 4, %v896_v53  ;;  %v772_v27 = vsel %vm764_vm9, %v755_v12, %v771_v29 }
 0x11b   : > { %2277 = vsinq.f32 %v506_v62  ;;  %v773_v41 = vsel %vm763_vm10, %v770_v25, %v772_v27  ;;  %v774_v31 = vsel %vm762_vm8, %v752_v9, %v755_v12  ;;  %v775_v33 = vsel %vm765_vm11, %v761_v17, 1326507024 }
 0x11c   : > { %v778_v40 = vshll.u32 %v738_v52, 8  ;;  %v512_v16 = vand.u32 3, %v511_v56  ;;  %v902_v57 = vclz %v2100_v58  ;;  %v766_v36 = vsel %vm762_vm8, %v746_v34, %v749_v0 }
 0x11d   : > { %v768_v11 = vsel %vm764_vm9, %v752_v9, %v767_v22  ;;  %v776_v37 = vsel %vm764_vm9, %v758_v13, %v775_v33  ;;  %v1045_v26 = vand.u32 2139095040, %v2922_v23  ;;  %v921_v39 = vsel %vm836_vm7, %v920_v21, %v896_v53 }
 0x11e   : > { %v2945_v6 = vmul.u32.u64.low %v778_v40, %v773_v41  ;;  %v2946_v15 = vmul.u32.u64.high %v778_v40, %v773_v41, %v2945_v6  ;;  %v2101_v32 = vadd.s32 4294967294, %v902_v57  ;;  %v777_v52 = vsel %vm763_vm10, %v774_v31, %v776_v37 }
 0x11f   : > { %v1042_v10 = vand.u32 2147483647, %v2922_v23  ;;  %v769_v47 = vsel %vm763_vm10, %v766_v36, %v768_v11  ;;  %v2955_v42 = vmul.u32.u64.low %v778_v40, %v777_v52  ;;  %v2956_v51 = vmul.u32.u64.high %v778_v40, %v777_v52, %v2955_v42  ;;  %v2979_v36 = vld [vmem:[%s3787_s2] ss:$0 sm:$0xff] }
 0x120   : > { %v1046_v54 = vshrl.u32 %v1045_v26, 23  ;;  %vm513_vm12 = vcmp.lt.s32.totalorder %v512_v16, 2  ;;  %vm514_vm14 = vcmp.eq.s32.totalorder %v512_v16, 0  ;;  %vm517_vm15 = vcmp.eq.s32.totalorder %v512_v16, 2 }
 0x121   : > { %vm2102_vm0 = vcmp.lt.s32.totalorder %v2101_v32, 0  ;;  %v890_v44 = vadd.s32 %v2863_v43, %v2869_v50  ;;  %v788_v53 = vadd.s32 1, %v2946_v15  ;;  %v923_v38 = vsel %vm2933_vm13, 0, %v921_v39 }
 0x122   : > { %v905_v19 = vsel %vm2102_vm0, 0, %v2101_v32  ;;  %v2107_v49 = vadd.s32 4294967169, %v1046_v54  ;;  %v785_v45 = vmul.u32 %v778_v40, %v769_v47  ;;  %vm787_vm1 = vc.u32 %v2956_v51, %v2945_v6 }
 0x123   : > { %v906_v2 = vsub.s32 32, %v905_v19  ;;  %v910_v28 = vsub.s32 4294967266, %v905_v19  ;;  %v907_v24 = vshll.u32 %v2919_v4, %v905_v19  ;;  %v1049_v0 = vand.u32 8388607, %v1042_v10 }
 0x124   : > { %v2276_v60 = vpop.eup %2275  ;;  %v1052_v43 = vadd.s32 1, %v2107_v49  ;;  %v789_v12 = vsel %vm787_vm1, %v788_v53, %v2946_v15  ;;  %v927_v56 = vadd.s32 3, %v923_v38  ;;  %vm510_vm3 = vweird.f32 %v2585_v35 }
 0x125   : > { %v2278_v50 = vpop.eup %2277  ;;  %v518_v3 = vxor.u32 2147483648, %v2276_v60  ;;  %v908_v46 = vshrl.u32 %v890_v44, %v906_v2  ;;  %v911_v9 = vadd.s32 127, %v910_v28  ;;  %v790_v14 = vadd.s32 %v789_v12, %v785_v45 }
 0x126   : > { %v515_v13 = vxor.u32 2147483648, %v2278_v50  ;;  %vm1053_vm2 = vcmp.gt.s32.totalorder %v1052_v43, 0  ;;  %v1050_v25 = vor.u32 8388608, %v1049_v0  ;;  %v2974_v57 = vand.u32 3, %v927_v56 }
 0x127   : > { %v519_v4 = vsel %vm517_vm15, %v518_v3, %v2278_v50  ;;  %v909_v34 = vor.u32 %v908_v46, %v907_v24  ;;  %v912_v17 = vshll.u32 %v911_v9, 23  ;;  %v1054_v62 = vsel %vm1053_vm2, %v1052_v43, 0 }
 0x128   : > { %v516_v20 = vsel %vm514_vm14, %v2276_v60, %v515_v13  ;;  %v791_v22 = vadd.s32 536870912, %v790_v14  ;;  %v1056_v29 = vand.u32 31, %v1054_v62  ;;  %v2983_v11 = vadd.f32 %v2979_v36, %v2916_v7 }
 0x129   : > { %v520_v58 = vsel %vm513_vm12, %v516_v20, %v519_v4  ;;  %v913_v21 = vor.u32 4788187, %v912_v17  ;;  %v916_v40 = vcvt.s32.f32 %v909_v34  ;;  %v2987_v15 = vshll.u32 %v1050_v25, 8 }
 0x12a   : > { %v521_v27 = vsel %vm510_vm3, nan, %v520_v58  ;;  %v792_v41 = vshrl.u32 %v791_v22, 30  ;;  %v1057_v31 = vsub.s32 32, %v1056_v29  ;;  %v1059_v16 = vshll.u32 %v2396_v55, %v1056_v29 }
 0x12b   : > { %1979 = vst [vmem:[%s2768_s8 + $0x8] sm:$0xff] %v521_v27  ;;  %v914_v33 = vand.u32 2147483647, %v913_v21  ;;  %v786_v47 = vadd.s32 %v2945_v6, %v2956_v51  ;;  %v1055_v7 = vshrl.u32 %v1054_v62, 5  ;;  %v1062_v54 = vshll.u32 %v2397_v59, %v1056_v29 }
 0x12c   : > { %v793_v35 = vshll.u32 %v792_v41, 30  ;;  %v1060_v37 = vshrl.u32 %v2397_v59, %v1057_v31  ;;  %v1063_v32 = vshrl.u32 %v2398_v61, %v1057_v31  ;;  %v1066_v39 = vshrl.u32 %v2399_v63, %v1057_v31 }
 0x12d   : > { %v917_v26 = vmul.f32 %v916_v40, %v914_v33  ;;  %v1069_v52 = vshrl.u32 %v2400_v1, %v1057_v31  ;;  %v1065_v53 = vshll.u32 %v2398_v61, %v1056_v29  ;;  %v1068_v49 = vshll.u32 %v2399_v63, %v1056_v29 }
 0x12e   : > { %v2994_v42 = vsub.s32 %v790_v14, %v793_v35  ;;  %v1061_v19 = vor.u32 %v1060_v37, %v1059_v16  ;;  %vm732_vm4 = vcmp.lt.s32.totalorder %v2807_v48, 0  ;;  %v1064_v28 = vor.u32 %v1063_v32, %v1062_v54 }
 0x12f   : > { %v918_v44 = vxor.u32 2147483648, %v917_v26  ;;  %v1071_v38 = vshll.u32 %v2400_v1, %v1056_v29  ;;  %v1072_v6 = vshrl.u32 %v2401_v8, %v1057_v31  ;;  %v1067_v45 = vor.u32 %v1066_v39, %v1065_v53 }
 0x130   : > { %v796_v2 = vsub.s32 0, %v2994_v42  ;;  %v1070_v60 = vor.u32 %v1069_v52, %v1068_v49  ;;  %v941_v24 = vand.u32 2139095040, %v2983_v11  ;;  %v816_v50 = vsub.s32 4, %v792_v41 }
 0x131   : > { %v919_v51 = vsel %vm836_vm7, %v918_v44, %v917_v26  ;;  %v1073_v3 = vor.u32 %v1072_v6, %v1071_v38  ;;  %v1058_v46 = vshrl.u32 %v2396_v55, %v1057_v31  ;;  %vm1074_vm5 = vcmp.lt.s32.totalorder %v1055_v7, 1 }
 0x132   : > { %v922_v0 = vsel %vm2933_vm13, %v2695_v5, %v919_v51  ;;  %v2096_v43 = vmin.u32 %v796_v2, %v2994_v42  ;;  %vm1075_vm6 = vcmp.lt.s32.totalorder %v1055_v7, 2  ;;  %vm1077_vm7 = vcmp.lt.s32.totalorder %v1055_v7, 4 }
 0x133   : > { %2279 = vcosq.f32 %v922_v0  ;;  %v1082_v12 = vsel %vm1074_vm5, %v1061_v19, %v1064_v28  ;;  %vm1076_vm8 = vcmp.lt.s32.totalorder %v1055_v7, 3  ;;  %v1079_v13 = vsel %vm1077_vm7, %v1067_v45, 2102212464 }
 0x134   : > { %2281 = vsinq.f32 %v922_v0  ;;  %v798_v9 = vclz %v2096_v43  ;;  %v1083_v56 = vsel %vm1077_vm7, %v1070_v60, 920167782  ;;  %v1086_v14 = vsel %vm1074_vm5, %v1064_v28, %v1067_v45 }
 0x135   : > { %v1078_v18 = vsel %vm1074_vm5, %v1058_v46, %v1061_v19  ;;  %v1084_v34 = vsel %vm1076_vm8, %v1067_v45, %v1083_v56  ;;  %v1087_v17 = vsel %vm1077_vm7, %v1073_v3, 1326507024  ;;  %v1080_v62 = vsel %vm1076_vm8, %v1064_v28, %v1079_v13  ;;  %v237_v28 = vpop.permute.xlu1 %236  ;;  %v3048_v3 = vld [vmem:[%s3786_s1] ss:$0 sm:$0xff] }
 0x136   : > { %v2097_v4 = vadd.s32 4294967294, %v798_v9  ;;  %v1085_v20 = vsel %vm1075_vm6, %v1082_v12, %v1084_v34  ;;  %v1088_v22 = vsel %vm1076_vm8, %v1070_v60, %v1087_v17  ;;  %v942_v25 = vshrl.u32 %v941_v24, 23  ;;  %v232_v9 = vpop.permute.xlu0 %231 }
 0x137   : > { %v1089_v29 = vsel %vm1075_vm6, %v1086_v14, %v1088_v22  ;;  %v3014_v58 = vmul.u32.u64.low %v2987_v15, %v1085_v20  ;;  %v3015_v21 = vmul.u32.u64.high %v2987_v15, %v1085_v20, %v3014_v58  ;;  %v817_v31 = vsel %vm732_vm4, %v816_v50, %v792_v41 }
 0x138   : > { %vm2098_vm10 = vcmp.lt.s32.totalorder %v2097_v4, 0  ;;  %v3021_v33 = vmul.u32.u64.low %v2987_v15, %v1089_v29  ;;  %v3022_v40 = vmul.u32.u64.high %v2987_v15, %v1089_v29, %v3021_v33  ;;  %v1081_v37 = vsel %vm1075_vm6, %v1078_v18, %v1080_v62 }
 0x139   : > { %v801_v27 = vsel %vm2098_vm10, 0, %v2097_v4  ;;  %v2103_v26 = vadd.s32 4294967169, %v942_v25  ;;  %vm929_vm9 = vcmp.lt.s32.totalorder %v2974_v57, 2  ;;  %vm930_vm11 = vcmp.eq.s32.totalorder %v2974_v57, 0 }
 0x13a   : > { %v802_v35 = vsub.s32 32, %v801_v27  ;;  %v806_v16 = vsub.s32 4294967266, %v801_v27  ;;  %vm3029_vm13 = vcmp.le.f32.partialorder %v730_v30, 0.7853982  ;;  %v803_v41 = vshll.u32 %v2994_v42, %v801_v27 }
 0x13b   : > { %v1100_v54 = vadd.s32 1, %v3015_v21  ;;  %v948_v44 = vadd.s32 1, %v2103_v26  ;;  %vm933_vm12 = vcmp.eq.s32.totalorder %v2974_v57, 2  ;;  %v819_v19 = vsel %vm3029_vm13, 0, %v817_v31 }
 0x13c   : > { %v804_v39 = vshrl.u32 %v786_v47, %v802_v35  ;;  %v807_v52 = vadd.s32 127, %v806_v16  ;;  %v1097_v53 = vmul.u32 %v2987_v15, %v1081_v37  ;;  %vm1099_vm14 = vc.u32 %v3022_v40, %v3014_v58 }
 0x13d   : > { %v2280_v7 = vpop.eup %2279  ;;  %v1101_v47 = vsel %vm1099_vm14, %v1100_v54, %v3015_v21  ;;  %v938_v51 = vand.u32 2147483647, %v2983_v11  ;;  %vm949_vm15 = vcmp.gt.s32.totalorder %v948_v44, 0  ;;  %v823_v24 = vadd.s32 3, %v819_v19 }
 0x13e   : > { %v2282_v30 = vpop.eup %2281  ;;  %v934_v49 = vxor.u32 2147483648, %v2280_v7  ;;  %v805_v2 = vor.u32 %v804_v39, %v803_v41  ;;  %v808_v42 = vshll.u32 %v807_v52, 23  ;;  %v1102_v6 = vadd.s32 %v1101_v47, %v1097_v53 }
 0x13f   : > { %v931_v38 = vxor.u32 2147483648, %v2282_v30  ;;  %v950_v15 = vsel %vm949_vm15, %v948_v44, 0  ;;  %v284_v46 = vmul.f32 %v3048_v3, %v237_v28  ;;  %vm926_vm0 = vweird.f32 %v2695_v5 }
 0x140   : > { %v935_v45 = vsel %vm933_vm12, %v934_v49, %v2282_v30  ;;  %v809_v60 = vor.u32 4788187, %v808_v42  ;;  %v1103_v43 = vadd.s32 536870912, %v1102_v6  ;;  %v952_v50 = vand.u32 31, %v950_v15 }
 0x141   : > { %v932_v0 = vsel %vm930_vm11, %v2280_v7, %v931_v38  ;;  %v812_v56 = vcvt.s32.f32 %v805_v2  ;;  %v945_v18 = vand.u32 8388607, %v938_v51  ;;  %v3057_v62 = vand.u32 3, %v823_v24 }
 0x142   : > { %v936_v12 = vsel %vm929_vm9, %v932_v0, %v935_v45  ;;  %v810_v13 = vand.u32 2147483647, %v809_v60  ;;  %v1104_v4 = vshrl.u32 %v1103_v43, 30  ;;  %v953_v34 = vsub.s32 32, %v952_v50 }
 0x143   : > { %v937_v14 = vsel %vm926_vm0, nan, %v936_v12  ;;  %v3060_v20 = vmul.f32 %v3048_v3, %v232_v9  ;;  %v955_v5 = vshll.u32 %v2396_v55, %v952_v50  ;;  %v3065_v25 = vadd.f32 %v2979_v36, %v284_v46 }
 0x144   : > { %1983 = vst [vmem:[%s2768_s8 + $0x28] sm:$0xff] %v937_v14  ;;  %v813_v17 = vmul.f32 %v812_v56, %v810_v13  ;;  %v1105_v22 = vshll.u32 %v1104_v4, 30  ;;  %v956_v57 = vshrl.u32 %v2397_v59, %v953_v34  ;;  %v959_v21 = vshrl.u32 %v2398_v61, %v953_v34 }
 0x145   : > { %v962_v27 = vshrl.u32 %v2399_v63, %v953_v34  ;;  %v965_v31 = vshrl.u32 %v2400_v1, %v953_v34  ;;  %v946_v35 = vor.u32 8388608, %v945_v18  ;;  %v951_v16 = vshrl.u32 %v950_v15, 5 }
 0x146   : > { %v814_v29 = vxor.u32 2147483648, %v813_v17  ;;  %v3070_v33 = vsub.s32 %v1102_v6, %v1105_v22  ;;  %v958_v37 = vshll.u32 %v2397_v59, %v952_v50  ;;  %vm1044_vm1 = vcmp.lt.s32.totalorder %v2922_v23, 0 }
 0x147   : > { %v957_v41 = vor.u32 %v956_v57, %v955_v5  ;;  %v961_v39 = vshll.u32 %v2398_v61, %v952_v50  ;;  %v964_v52 = vshll.u32 %v2399_v63, %v952_v50  ;;  %v967_v19 = vshll.u32 %v2400_v1, %v952_v50 }
 0x148   : > { %v815_v26 = vsel %vm732_vm4, %v814_v29, %v813_v17  ;;  %v1108_v44 = vsub.s32 0, %v3070_v33  ;;  %v960_v7 = vor.u32 %v959_v21, %v958_v37  ;;  %v968_v49 = vshrl.u32 %v2401_v8, %v953_v34 }
 0x149   : > { %v818_v54 = vsel %vm3029_vm13, %v2807_v48, %v815_v26  ;;  %v963_v53 = vor.u32 %v962_v27, %v961_v39  ;;  %v966_v30 = vor.u32 %v965_v31, %v964_v52  ;;  %vm3086_vm2 = vcmp.le.f32.partialorder %v1042_v10, 0.7853982 }
 0x14a   : > { %2283 = vcosq.f32 %v818_v54  ;;  %v2108_v32 = vmin.u32 %v1108_v44, %v3070_v33  ;;  %v1128_v42 = vsub.s32 4, %v1104_v4  ;;  %v986_v47 = vshll.u32 %v946_v35, 8 }
 0x14b   : > { %2285 = vsinq.f32 %v818_v54  ;;  %v954_v28 = vshrl.u32 %v2396_v55, %v953_v34  ;;  %v969_v38 = vor.u32 %v968_v49, %v967_v19  ;;  %vm970_vm3 = vcmp.lt.s32.totalorder %v951_v16, 1 }
 0x14c   : > { %vm971_vm4 = vcmp.lt.s32.totalorder %v951_v16, 2  ;;  %v1110_v6 = vclz %v2108_v32  ;;  %vm972_vm5 = vcmp.lt.s32.totalorder %v951_v16, 3  ;;  %vm973_vm6 = vcmp.lt.s32.totalorder %v951_v16, 4 }
 0x14d   : > { %v978_v45 = vsel %vm970_vm3, %v957_v41, %v960_v7  ;;  %v975_v60 = vsel %vm973_vm6, %v963_v53, 2102212464  ;;  %v979_v24 = vsel %vm973_vm6, %v966_v30, 920167782  ;;  %v982_v15 = vsel %vm970_vm3, %v960_v7, %v963_v53 }
 0x14e   : > { %v983_v10 = vsel %vm973_vm6, %v969_v38, 1326507024  ;;  %vm826_vm7 = vcmp.eq.s32.totalorder %v3057_v62, 0  ;;  %v2109_v0 = vadd.s32 4294967294, %v1110_v6  ;;  %v974_v43 = vsel %vm970_vm3, %v954_v28, %v957_v41 }
 0x14f   : > { %v980_v50 = vsel %vm972_vm5, %v963_v53, %v979_v24  ;;  %v984_v46 = vsel %vm972_vm5, %v966_v30, %v983_v10  ;;  %v976_v9 = vsel %vm972_vm5, %v960_v7, %v975_v60  ;;  %v1253_v56 = vand.u32 2139095040, %v3065_v25 }
 0x150   : > { %v981_v12 = vsel %vm971_vm4, %v978_v45, %v980_v50  ;;  %v985_v13 = vsel %vm971_vm4, %v982_v15, %v984_v46  ;;  %vm2110_vm8 = vcmp.lt.s32.totalorder %v2109_v0, 0  ;;  %v1129_v14 = vsel %vm1044_vm1, %v1128_v42, %v1104_v4 }
 0x151   : > { %v3098_v18 = vmul.u32.u64.low %v986_v47, %v985_v13  ;;  %v3099_v34 = vmul.u32.u64.high %v986_v47, %v985_v13, %v3098_v18  ;;  %v1113_v17 = vsel %vm2110_vm8, 0, %v2109_v0  ;;  %v1254_v57 = vshrl.u32 %v1253_v56, 23 }
 0x152   : > { %v3101_v22 = vmul.u32.u64.low %v986_v47, %v981_v12  ;;  %v3102_v5 = vmul.u32.u64.high %v986_v47, %v981_v12, %v3101_v22  ;;  %v1098_v29 = vadd.s32 %v3014_v58, %v3022_v40  ;;  %v1114_v21 = vsub.s32 32, %v1113_v17 }
 0x153   : > { %v1118_v27 = vsub.s32 4294967266, %v1113_v17  ;;  %v977_v31 = vsel %vm971_vm4, %v974_v43, %v976_v9  ;;  %vm829_vm10 = vcmp.eq.s32.totalorder %v3057_v62, 2  ;;  %v1131_v4 = vsel %vm3086_vm2, 0, %v1129_v14 }
 0x154   : > { %v2284_v35 = vpop.eup %2283  ;;  %v1250_v37 = vand.u32 2147483647, %v3065_v25  ;;  %v2115_v26 = vadd.s32 4294967169, %v1254_v57  ;;  %v1115_v52 = vshll.u32 %v3070_v33, %v1113_v17  ;;  %v1116_v54 = vshrl.u32 %v1098_v29, %v1114_v21 }
 0x155   : > { %v2286_v41 = vpop.eup %2285  ;;  %v830_v39 = vxor.u32 2147483648, %v2284_v35  ;;  %v1119_v44 = vadd.s32 127, %v1118_v27  ;;  %v993_v40 = vmul.u32 %v986_v47, %v977_v31  ;;  %vm995_vm9 = vc.u32 %v3099_v34, %v3101_v22 }
 0x156   : > { %v827_v58 = vxor.u32 2147483648, %v2286_v41  ;;  %v996_v16 = vadd.s32 1, %v3102_v5  ;;  %v1117_v19 = vor.u32 %v1116_v54, %v1115_v52  ;;  %v1260_v30 = vadd.s32 1, %v2115_v26 }
 0x157   : > { %v831_v7 = vsel %vm829_vm10, %v830_v39, %v2286_v41  ;;  %v1120_v53 = vshll.u32 %v1119_v44, 23  ;;  %vm822_vm11 = vweird.f32 %v2807_v48  ;;  %vm825_vm13 = vcmp.lt.s32.totalorder %v3057_v62, 2 }
 0x158   : > { %v828_v33 = vsel %vm826_vm7, %v2284_v35, %v827_v58  ;;  %v997_v49 = vsel %vm995_vm9, %v996_v16, %v3102_v5  ;;  %v3123_v28 = vadd.f32 %v2979_v36, %v3060_v20  ;;  %v1135_v6 = vadd.s32 3, %v1131_v4 }
 0x159   : > { %v832_v32 = vsel %vm825_vm13, %v828_v33, %v831_v7  ;;  %v1121_v42 = vor.u32 4788187, %v1120_v53  ;;  %v998_v47 = vadd.s32 %v997_v49, %v993_v40  ;;  %v1257_v45 = vand.u32 8388607, %v1250_v37 }
 0x15a   : > { %v833_v38 = vsel %vm822_vm11, nan, %v832_v32  ;;  %vm1261_vm12 = vcmp.gt.s32.totalorder %v1260_v30, 0  ;;  %v1124_v60 = vcvt.s32.f32 %v1117_v19  ;;  %vm940_vm14 = vcmp.lt.s32.totalorder %v2983_v11, 0 }
 0x15b   : > { %1982 = vst [vmem:[%s2768_s8 + $0x20] sm:$0xff] %v833_v38  ;;  %v1122_v48 = vand.u32 2147483647, %v1121_v42  ;;  %v999_v62 = vadd.s32 536870912, %v998_v47  ;;  %v1262_v24 = vsel %vm1261_vm12, %v1260_v30, 0  ;;  %v3129_v43 = vand.u32 3, %v1135_v6 }
 0x15c   : > { %v1264_v15 = vand.u32 31, %v1262_v24  ;;  %v1258_v20 = vor.u32 8388608, %v1257_v45  ;;  %v1149_v46 = vand.u32 2139095040, %v3123_v28  ;;  %v1263_v13 = vshrl.u32 %v1262_v24, 5 }
 0x15d   : > { %v1125_v10 = vmul.f32 %v1124_v60, %v1122_v48  ;;  %v1000_v0 = vshrl.u32 %v999_v62, 30  ;;  %vm3152_vm15 = vcmp.le.f32.partialorder %v938_v51, 0.7853982  ;;  %v1146_v7 = vand.u32 2147483647, %v3123_v28 }
 0x15e   : > { %v1265_v50 = vsub.s32 32, %v1264_v15  ;;  %v1267_v56 = vshll.u32 %v2396_v55, %v1264_v15  ;;  %v1270_v18 = vshll.u32 %v2397_v59, %v1264_v15  ;;  %v1273_v21 = vshll.u32 %v2398_v61, %v1264_v15 }
 0x15f   : > { %v1126_v9 = vxor.u32 2147483648, %v1125_v10  ;;  %v1001_v12 = vshll.u32 %v1000_v0, 30  ;;  %v1024_v35 = vsub.s32 4, %v1000_v0  ;;  %v1276_v26 = vshll.u32 %v2399_v63, %v1264_v15 }
 0x160   : > { %v1268_v14 = vshrl.u32 %v2397_v59, %v1265_v50  ;;  %v1271_v17 = vshrl.u32 %v2398_v61, %v1265_v50  ;;  %v1274_v5 = vshrl.u32 %v2399_v63, %v1265_v50  ;;  %v1277_v27 = vshrl.u32 %v2400_v1, %v1265_v50 }
 0x161   : > { %v1127_v57 = vsel %vm1044_vm1, %v1126_v9, %v1125_v10  ;;  %v3139_v29 = vsub.s32 %v998_v47, %v1001_v12  ;;  %v1279_v44 = vshll.u32 %v2400_v1, %v1264_v15  ;;  %v1280_v58 = vshrl.u32 %v2401_v8, %v1265_v50 }
 0x162   : > { %v1130_v31 = vsel %vm3086_vm2, %v2922_v23, %v1127_v57  ;;  %v1269_v4 = vor.u32 %v1268_v14, %v1267_v56  ;;  %v1272_v39 = vor.u32 %v1271_v17, %v1270_v18  ;;  %v1275_v52 = vor.u32 %v1274_v5, %v1273_v21 }
 0x163   : > { %2287 = vcosq.f32 %v1130_v31  ;;  %v1004_v41 = vsub.s32 0, %v3139_v29  ;;  %v1278_v54 = vor.u32 %v1277_v27, %v1276_v26  ;;  %v1298_v16 = vshll.u32 %v1258_v20, 8 }
 0x164   : > { %2289 = vsinq.f32 %v1130_v31  ;;  %v1150_v19 = vshrl.u32 %v1149_v46, 23  ;;  %v1025_v53 = vsel %vm940_vm14, %v1024_v35, %v1000_v0  ;;  %v1266_v30 = vshrl.u32 %v2396_v55, %v1265_v50 }
 0x165   : > { %v2104_v40 = vmin.u32 %v1004_v41, %v3139_v29  ;;  %v1281_v33 = vor.u32 %v1280_v58, %v1279_v44  ;;  %vm1282_vm0 = vcmp.lt.s32.totalorder %v1263_v13, 1  ;;  %vm1141_vm1 = vcmp.eq.s32.totalorder %v3129_v43, 2 }
 0x166   : > { %vm1283_vm2 = vcmp.lt.s32.totalorder %v1263_v13, 2  ;;  %vm1284_vm3 = vcmp.lt.s32.totalorder %v1263_v13, 3  ;;  %vm1285_vm4 = vcmp.lt.s32.totalorder %v1263_v13, 4  ;;  %vm1138_vm5 = vcmp.eq.s32.totalorder %v3129_v43, 0 }
 0x167   : > { %v1006_v49 = vclz %v2104_v40  ;;  %v1287_v51 = vsel %vm1285_vm4, %v1275_v52, 2102212464  ;;  %v1290_v32 = vsel %vm1282_vm0, %v1269_v4, %v1272_v39  ;;  %v1291_v42 = vsel %vm1285_vm4, %v1278_v54, 920167782 }
 0x168   : > { %v1294_v47 = vsel %vm1282_vm0, %v1272_v39, %v1275_v52  ;;  %vm1137_vm6 = vcmp.lt.s32.totalorder %v3129_v43, 2  ;;  %v1286_v6 = vsel %vm1282_vm0, %v1266_v30, %v1269_v4  ;;  %v1292_v45 = vsel %vm1284_vm3, %v1275_v52, %v1291_v42 }
 0x169   : > { %v2105_v38 = vadd.s32 4294967294, %v1006_v49  ;;  %v1295_v48 = vsel %vm1285_vm4, %v1281_v33, 1326507024  ;;  %vm1134_vm7 = vweird.f32 %v2922_v23  ;;  %v1288_v60 = vsel %vm1284_vm3, %v1272_v39, %v1287_v51  ;;  %v242_v49 = vpop.permute.xlu0 %241 }
 0x16a   : > { %v1293_v62 = vsel %vm1283_vm2, %v1290_v32, %v1292_v45  ;;  %v1296_v24 = vsel %vm1284_vm3, %v1278_v54, %v1295_v48  ;;  %v2111_v15 = vadd.s32 4294967169, %v1150_v19  ;;  %v994_v50 = vadd.s32 %v3101_v22, %v3099_v34 }
 0x16b   : > { %vm2106_vm8 = vcmp.lt.s32.totalorder %v2105_v38, 0  ;;  %v1297_v10 = vsel %vm1283_vm2, %v1294_v47, %v1296_v24  ;;  %v3167_v0 = vmul.u32.u64.low %v1298_v16, %v1293_v62  ;;  %v3168_v20 = vmul.u32.u64.high %v1298_v16, %v1293_v62, %v3167_v0 }
 0x16c   : > { %v1009_v46 = vsel %vm2106_vm8, 0, %v2105_v38  ;;  %v3173_v9 = vmul.u32.u64.low %v1298_v16, %v1297_v10  ;;  %v3174_v12 = vmul.u32.u64.high %v1298_v16, %v1297_v10, %v3173_v9  ;;  %v1289_v17 = vsel %vm1283_vm2, %v1286_v6, %v1288_v60 }
 0x16d   : > { %v2288_v56 = vpop.eup %2287  ;;  %v1010_v14 = vsub.s32 32, %v1009_v46  ;;  %v1014_v18 = vsub.s32 4294967266, %v1009_v46  ;;  %v1156_v5 = vadd.s32 1, %v2111_v15  ;;  %v1011_v27 = vshll.u32 %v3139_v29, %v1009_v46 }
 0x16e   : > { %v2290_v57 = vpop.eup %2289  ;;  %v1142_v21 = vxor.u32 2147483648, %v2288_v56  ;;  %v1027_v31 = vsel %vm3152_vm15, 0, %v1025_v53  ;;  %v1153_v34 = vand.u32 8388607, %v1146_v7  ;;  %v1308_v26 = vadd.s32 1, %v3168_v20  ;;  %v247_v53 = vpop.permute.xlu1 %246 }
 0x16f   : > { %v1139_v22 = vxor.u32 2147483648, %v2290_v57  ;;  %v1012_v35 = vshrl.u32 %v994_v50, %v1010_v14  ;;  %v1015_v4 = vadd.s32 127, %v1014_v18  ;;  %v1305_v41 = vmul.u32 %v1298_v16, %v1289_v17 }
 0x170   : > { %v1143_v13 = vsel %vm1141_vm1, %v1142_v21, %v2290_v57  ;;  %vm1307_vm10 = vc.u32 %v3174_v12, %v3167_v0  ;;  %vm1157_vm9 = vcmp.gt.s32.totalorder %v1156_v5, 0  ;;  %v1031_v58 = vadd.s32 3, %v1027_v31 }
 0x171   : > { %v1140_v29 = vsel %vm1138_vm5, %v2288_v56, %v1139_v22  ;;  %v1013_v39 = vor.u32 %v1012_v35, %v1011_v27  ;;  %v1016_v52 = vshll.u32 %v1015_v4, 23  ;;  %v1309_v54 = vsel %vm1307_vm10, %v1308_v26, %v3168_v20 }
 0x172   : > { %v1144_v44 = vsel %vm1137_vm6, %v1140_v29, %v1143_v13  ;;  %v1310_v40 = vadd.s32 %v1309_v54, %v1305_v41  ;;  %v1158_v19 = vsel %vm1157_vm9, %v1156_v5, 0  ;;  %v1154_v33 = vor.u32 8388608, %v1153_v34 }
 0x173   : > { %v1145_v16 = vsel %vm1134_vm7, nan, %v1144_v44  ;;  %v1017_v30 = vor.u32 4788187, %v1016_v52  ;;  %v1160_v32 = vand.u32 31, %v1158_v19  ;;  %v1020_v47 = vcvt.s32.f32 %v1013_v39 }
 0x174   : > { %1985 = vst [vmem:[%s2768_s8 + $0x38] sm:$0xff] %v1145_v16  ;;  %v1311_v51 = vadd.s32 536870912, %v1310_v40  ;;  %v286_v38 = vmul.f32 %v3048_v3, %v247_v53  ;;  %v3196_v6 = vand.u32 3, %v1031_v58  ;;  %v3199_v48 = vmul.f32 %v3048_v3, %v242_v49 }
 0x175   : > { %v1018_v42 = vand.u32 2147483647, %v1017_v30  ;;  %v1161_v45 = vsub.s32 32, %v1160_v32  ;;  %vm1252_vm11 = vcmp.lt.s32.totalorder %v3065_v25, 0  ;;  %v3202_v23 = vshrl.u32 %v1158_v19, 5 }
 0x176   : > { %v1312_v43 = vshrl.u32 %v1311_v51, 30  ;;  %v1163_v62 = vshll.u32 %v2396_v55, %v1160_v32  ;;  %v3205_v24 = vshll.u32 %v1154_v33, 8  ;;  %v1166_v20 = vshll.u32 %v2397_v59, %v1160_v32 }
 0x177   : > { %v1021_v60 = vmul.f32 %v1020_v47, %v1018_v42  ;;  %v1164_v10 = vshrl.u32 %v2397_v59, %v1161_v45  ;;  %v1169_v50 = vshll.u32 %v2398_v61, %v1160_v32  ;;  %v1167_v9 = vshrl.u32 %v2398_v61, %v1161_v45 }
 0x178   : > { %v1313_v15 = vshll.u32 %v1312_v43, 30  ;;  %v1170_v56 = vshrl.u32 %v2399_v63, %v1161_v45  ;;  %v1173_v14 = vshrl.u32 %v2400_v1, %v1161_v45  ;;  %v1172_v17 = vshll.u32 %v2399_v63, %v1160_v32 }
 0x179   : > { %v1022_v46 = vxor.u32 2147483648, %v1021_v60  ;;  %v1175_v5 = vshll.u32 %v2400_v1, %v1160_v32  ;;  %v1176_v57 = vshrl.u32 %v2401_v8, %v1161_v45  ;;  %vm3222_vm13 = vcmp.le.f32.partialorder %v1250_v37, 0.7853982 }
 0x17a   : > { %v3213_v18 = vsub.s32 %v1310_v40, %v1313_v15  ;;  %v1165_v31 = vor.u32 %v1164_v10, %v1163_v62  ;;  %v1168_v34 = vor.u32 %v1167_v9, %v1166_v20  ;;  %v1171_v22 = vor.u32 %v1170_v56, %v1169_v50 }
 0x17b   : > { %v1023_v21 = vsel %vm940_vm14, %v1022_v46, %v1021_v60  ;;  %v1336_v26 = vsub.s32 4, %v1312_v43  ;;  %v1174_v13 = vor.u32 %v1173_v14, %v1172_v17  ;;  %v1177_v41 = vor.u32 %v1176_v57, %v1175_v5 }
 0x17c   : > { %v1026_v35 = vsel %vm3152_vm15, %v2983_v11, %v1023_v21  ;;  %v1316_v4 = vsub.s32 0, %v3213_v18  ;;  %vm1178_vm12 = vcmp.lt.s32.totalorder %v3202_v23, 1  ;;  %v3232_v37 = vadd.f32 %v2979_v36, %v286_v38 }
 0x17d   : > { %2291 = vcosq.f32 %v1026_v35  ;;  %vm1179_vm14 = vcmp.lt.s32.totalorder %v3202_v23, 2  ;;  %vm1181_vm0 = vcmp.lt.s32.totalorder %v3202_v23, 4  ;;  %v1162_v2 = vshrl.u32 %v2396_v55, %v1161_v45 }
 0x17e   : > { %2293 = vsinq.f32 %v1026_v35  ;;  %v2116_v29 = vmin.u32 %v1316_v4, %v3213_v18  ;;  %v1183_v39 = vsel %vm1181_vm0, %v1171_v22, 2102212464  ;;  %v1186_v52 = vsel %vm1178_vm12, %v1165_v31, %v1168_v34 }
 0x17f   : > { %v1187_v54 = vsel %vm1181_vm0, %v1174_v13, 920167782  ;;  %v1337_v58 = vsel %vm1252_vm11, %v1336_v26, %v1312_v43  ;;  %vm1180_vm15 = vcmp.lt.s32.totalorder %v3202_v23, 3  ;;  %v1190_v40 = vsel %vm1178_vm12, %v1168_v34, %v1171_v22 }
 0x180   : > { %v1318_v44 = vclz %v2116_v29  ;;  %v1182_v19 = vsel %vm1178_vm12, %v1162_v2, %v1165_v31  ;;  %v1188_v53 = vsel %vm1180_vm15, %v1171_v22, %v1187_v54  ;;  %v1191_v16 = vsel %vm1181_vm0, %v1177_v41, 1326507024 }
 0x181   : > { %v1461_v30 = vand.u32 2139095040, %v3232_v37  ;;  %vm1034_vm1 = vcmp.eq.s32.totalorder %v3196_v6, 0  ;;  %v1184_v49 = vsel %vm1180_vm15, %v1168_v34, %v1183_v39  ;;  %v1189_v51 = vsel %vm1179_vm14, %v1186_v52, %v1188_v53 }
 0x182   : > { %v2117_v33 = vadd.s32 4294967294, %v1318_v44  ;;  %v1192_v32 = vsel %vm1180_vm15, %v1174_v13, %v1191_v16  ;;  %vm1033_vm2 = vcmp.lt.s32.totalorder %v3196_v6, 2  ;;  %v1339_v45 = vsel %vm3222_vm13, 0, %v1337_v58 }
 0x183   : > { %v1193_v42 = vsel %vm1179_vm14, %v1190_v40, %v1192_v32  ;;  %v3249_v47 = vmul.u32.u64.low %v3205_v24, %v1189_v51  ;;  %v3250_v38 = vmul.u32.u64.high %v3205_v24, %v1189_v51, %v3249_v47  ;;  %v1462_v43 = vshrl.u32 %v1461_v30, 23 }
 0x184   : > { %vm2118_vm3 = vcmp.lt.s32.totalorder %v2117_v33, 0  ;;  %v3256_v60 = vmul.u32.u64.low %v3205_v24, %v1193_v42  ;;  %v3257_v62 = vmul.u32.u64.high %v3205_v24, %v1193_v42, %v3256_v60  ;;  %vm1037_vm4 = vcmp.eq.s32.totalorder %v3196_v6, 2 }
 0x185   : > { %v1321_v15 = vsel %vm2118_vm3, 0, %v2117_v33  ;;  %v2123_v10 = vadd.s32 4294967169, %v1462_v43  ;;  %v3262_v20 = vadd.f32 %v2979_v36, %v3199_v48  ;;  %v1306_v50 = vadd.s32 %v3167_v0, %v3174_v12 }
 0x186   : > { %v1322_v46 = vsub.s32 32, %v1321_v15  ;;  %v1326_v9 = vsub.s32 4294967266, %v1321_v15  ;;  %v1185_v56 = vsel %vm1179_vm14, %v1182_v19, %v1184_v49  ;;  %v1343_v17 = vadd.s32 3, %v1339_v45 }
 0x187   : > { %v2292_v14 = vpop.eup %2291  ;;  %v1204_v5 = vadd.s32 1, %v3250_v38  ;;  %v1458_v57 = vand.u32 2147483647, %v3232_v37  ;;  %v1468_v21 = vadd.s32 1, %v2123_v10  ;;  %v1323_v36 = vshll.u32 %v3213_v18, %v1321_v15 }
 0x188   : > { %v2294_v31 = vpop.eup %2293  ;;  %v1038_v34 = vxor.u32 2147483648, %v2292_v14  ;;  %v1324_v48 = vshrl.u32 %v1306_v50, %v1322_v46  ;;  %v1327_v22 = vadd.s32 127, %v1326_v9  ;;  %v1201_v0 = vmul.u32 %v3205_v24, %v1185_v56 }
 0x189   : > { %v1035_v35 = vxor.u32 2147483648, %v2294_v31  ;;  %vm1203_vm5 = vc.u32 %v3257_v62, %v3249_v47  ;;  %vm1469_vm6 = vcmp.gt.s32.totalorder %v1468_v21, 0  ;;  %v1465_v41 = vand.u32 8388607, %v1458_v57 }
 0x18a   : > { %v1039_v12 = vsel %vm1037_vm4, %v1038_v34, %v2294_v31  ;;  %v1325_v23 = vor.u32 %v1324_v48, %v1323_v36  ;;  %v1328_v4 = vshll.u32 %v1327_v22, 23  ;;  %v1205_v26 = vsel %vm1203_vm5, %v1204_v5, %v3250_v38 }
 0x18b   : > { %v1036_v18 = vsel %vm1034_vm1, %v2292_v14, %v1035_v35  ;;  %v1206_v13 = vadd.s32 %v1205_v26, %v1201_v0  ;;  %v1470_v24 = vsel %vm1469_vm6, %v1468_v21, 0  ;;  %vm1030_vm7 = vweird.f32 %v2983_v11 }
 0x18c   : > { %v1040_v29 = vsel %vm1033_vm2, %v1036_v18, %v1039_v12  ;;  %v1329_v2 = vor.u32 4788187, %v1328_v4  ;;  %v1357_v39 = vand.u32 2139095040, %v3262_v20  ;;  %v1472_v44 = vand.u32 31, %v1470_v24 }
 0x18d   : > { %v1041_v52 = vsel %vm1030_vm7, nan, %v1040_v29  ;;  %v1207_v54 = vadd.s32 536870912, %v1206_v13  ;;  %v1332_v40 = vcvt.s32.f32 %v1325_v23  ;;  %v3286_v19 = vand.u32 3, %v1343_v17 }
 0x18e   : > { %1984 = vst [vmem:[%s2768_s8 + $0x30] sm:$0xff] %v1041_v52  ;;  %v1330_v58 = vand.u32 2147483647, %v1329_v2  ;;  %v1466_v16 = vor.u32 8388608, %v1465_v41  ;;  %v1473_v30 = vsub.s32 32, %v1472_v44  ;;  %v1471_v49 = vshrl.u32 %v1470_v24, 5 }
 0x18f   : > { %v1208_v53 = vshrl.u32 %v1207_v54, 30  ;;  %v1475_v11 = vshll.u32 %v2396_v55, %v1472_v44  ;;  %v1358_v6 = vshrl.u32 %v1357_v39, 23  ;;  %v1478_v42 = vshll.u32 %v2397_v59, %v1472_v44 }
 0x190   : > { %v1333_v33 = vmul.f32 %v1332_v40, %v1330_v58  ;;  %v1476_v32 = vshrl.u32 %v2397_v59, %v1473_v30  ;;  %v1481_v38 = vshll.u32 %v2398_v61, %v1472_v44  ;;  %vm1148_vm8 = vcmp.lt.s32.totalorder %v3123_v28, 0 }
 0x191   : > { %v1209_v51 = vshll.u32 %v1208_v53, 30  ;;  %v1479_v45 = vshrl.u32 %v2398_v61, %v1473_v30  ;;  %v1482_v60 = vshrl.u32 %v2399_v63, %v1473_v30  ;;  %v1485_v15 = vshrl.u32 %v2400_v1, %v1473_v30 }
 0x192   : > { %v1334_v43 = vxor.u32 2147483648, %v1333_v33  ;;  %v1484_v50 = vshll.u32 %v2399_v63, %v1472_v44  ;;  %v1487_v46 = vshll.u32 %v2400_v1, %v1472_v44  ;;  %v1488_v9 = vshrl.u32 %v2401_v8, %v1473_v30 }
 0x193   : > { %v3296_v10 = vsub.s32 %v1206_v13, %v1209_v51  ;;  %v1477_v14 = vor.u32 %v1476_v32, %v1475_v11  ;;  %v1480_v17 = vor.u32 %v1479_v45, %v1478_v42  ;;  %v1483_v5 = vor.u32 %v1482_v60, %v1481_v38 }
 0x194   : > { %v1335_v56 = vsel %vm1252_vm11, %v1334_v43, %v1333_v33  ;;  %v1486_v34 = vor.u32 %v1485_v15, %v1484_v50  ;;  %vm1490_vm10 = vcmp.lt.s32.totalorder %v1471_v49, 1  ;;  %v1232_v36 = vsub.s32 4, %v1208_v53 }
 0x195   : > { %v1338_v21 = vsel %vm3222_vm13, %v3065_v25, %v1335_v56  ;;  %v1212_v31 = vsub.s32 0, %v3296_v10  ;;  %v1489_v48 = vor.u32 %v1488_v9, %v1487_v46  ;;  %vm1493_vm9 = vcmp.lt.s32.totalorder %v1471_v49, 4 }
 0x196   : > { %2295 = vcosq.f32 %v1338_v21  ;;  %vm3309_vm12 = vcmp.le.f32.partialorder %v1146_v7, 0.7853982  ;;  %v1474_v27 = vshrl.u32 %v2396_v55, %v1473_v30  ;;  %v1495_v0 = vsel %vm1493_vm9, %v1483_v5, 2102212464 }
 0x197   : > { %2297 = vsinq.f32 %v1338_v21  ;;  %v2112_v35 = vmin.u32 %v1212_v31, %v3296_v10  ;;  %vm1492_vm11 = vcmp.lt.s32.totalorder %v1471_v49, 3  ;;  %v1498_v12 = vsel %vm1490_vm10, %v1477_v14, %v1480_v17 }
 0x198   : > { %v1499_v23 = vsel %vm1493_vm9, %v1486_v34, 920167782  ;;  %v1506_v4 = vshll.u32 %v1466_v16, 8  ;;  %v1494_v18 = vsel %vm1490_vm10, %v1474_v27, %v1477_v14  ;;  %v1496_v13 = vsel %vm1492_vm11, %v1480_v17, %v1495_v0 }
 0x199   : > { %v1214_v26 = vclz %v2112_v35  ;;  %v1502_v7 = vsel %vm1490_vm10, %v1480_v17, %v1483_v5  ;;  %vm1491_vm13 = vcmp.lt.s32.totalorder %v1471_v49, 2  ;;  %v1500_v41 = vsel %vm1492_vm11, %v1483_v5, %v1499_v23 }
 0x19a   : > { %v1503_v24 = vsel %vm1493_vm9, %v1489_v48, 1326507024  ;;  %v2119_v29 = vadd.s32 4294967169, %v1358_v6  ;;  %v1233_v39 = vsel %vm1148_vm8, %v1232_v36, %v1208_v53  ;;  %v1501_v52 = vsel %vm1491_vm13, %v1498_v12, %v1500_v41  ;;  %v257_v48 = vpop.permute.xlu1 %256 }
 0x19b   : > { %v2113_v2 = vadd.s32 4294967294, %v1214_v26  ;;  %v1504_v54 = vsel %vm1492_vm11, %v1486_v34, %v1503_v24  ;;  %v1497_v44 = vsel %vm1491_vm13, %v1494_v18, %v1496_v13  ;;  %vm1346_vm0 = vcmp.eq.s32.totalorder %v3286_v19, 0 }
 0x19c   : > { %v1505_v58 = vsel %vm1491_vm13, %v1502_v7, %v1504_v54  ;;  %v3323_v40 = vmul.u32.u64.low %v1506_v4, %v1501_v52  ;;  %v3324_v16 = vmul.u32.u64.high %v1506_v4, %v1501_v52, %v3323_v40  ;;  %v1364_v11 = vadd.s32 1, %v2119_v29 }
 0x19d   : > { %vm2114_vm14 = vcmp.lt.s32.totalorder %v2113_v2, 0  ;;  %v3327_v30 = vmul.u32.u64.low %v1506_v4, %v1505_v58  ;;  %v3328_v33 = vmul.u32.u64.high %v1506_v4, %v1505_v58, %v3327_v30  ;;  %vm1349_vm15 = vcmp.eq.s32.totalorder %v3286_v19, 2 }
 0x19e   : > { %v1217_v49 = vsel %vm2114_vm14, 0, %v2113_v2  ;;  %v1354_v53 = vand.u32 2147483647, %v3262_v20  ;;  %v1202_v6 = vadd.s32 %v3249_v47, %v3257_v62  ;;  %vm1365_vm1 = vcmp.gt.s32.totalorder %v1364_v11, 0 }
 0x19f   : > { %v1218_v51 = vsub.s32 32, %v1217_v49  ;;  %v1222_v32 = vsub.s32 4294967266, %v1217_v49  ;;  %v1235_v38 = vsel %vm3309_vm12, 0, %v1233_v39  ;;  %v1513_v43 = vmul.u32 %v1506_v4, %v1497_v44 }
 0x1a0   : > { %v2296_v42 = vpop.eup %2295  ;;  %v1516_v45 = vadd.s32 1, %v3324_v16  ;;  %v1366_v60 = vsel %vm1365_vm1, %v1364_v11, 0  ;;  %v1219_v46 = vshll.u32 %v3296_v10, %v1217_v49  ;;  %vm1515_vm2 = vc.u32 %v3328_v33, %v3323_v40 }
 0x1a1   : > { %v2298_v15 = vpop.eup %2297  ;;  %v1350_v50 = vxor.u32 2147483648, %v2296_v42  ;;  %v1220_v9 = vshrl.u32 %v1202_v6, %v1218_v51  ;;  %v1223_v56 = vadd.s32 127, %v1222_v32  ;;  %v1361_v47 = vand.u32 8388607, %v1354_v53 }
 0x1a2   : > { %v1347_v14 = vxor.u32 2147483648, %v2298_v15  ;;  %v1368_v62 = vand.u32 31, %v1366_v60  ;;  %v1517_v31 = vsel %vm1515_vm2, %v1516_v45, %v3324_v16  ;;  %vm1345_vm3 = vcmp.lt.s32.totalorder %v3286_v19, 2 }
 0x1a3   : > { %v1351_v17 = vsel %vm1349_vm15, %v1350_v50, %v2298_v15  ;;  %v1221_v5 = vor.u32 %v1220_v9, %v1219_v46  ;;  %v1224_v21 = vshll.u32 %v1223_v56, 23  ;;  %v1518_v34 = vadd.s32 %v1517_v31, %v1513_v43 }
 0x1a4   : > { %v1348_v10 = vsel %vm1346_vm0, %v2296_v42, %v1347_v14  ;;  %v1369_v36 = vsub.s32 32, %v1368_v62  ;;  %vm1342_vm4 = vweird.f32 %v3065_v25  ;;  %v1239_v0 = vadd.s32 3, %v1235_v38  ;;  %v3369_v38 = vld [vmem:[%s3787_s2] ss:$0 sm:$0xff] }
 0x1a5   : > { %v1352_v35 = vsel %vm1345_vm3, %v1348_v10, %v1351_v17  ;;  %v1225_v27 = vor.u32 4788187, %v1224_v21  ;;  %v1519_v23 = vadd.s32 536870912, %v1518_v34  ;;  %v1362_v4 = vor.u32 8388608, %v1361_v47 }
 0x1a6   : > { %v1353_v12 = vsel %vm1342_vm4, nan, %v1352_v35  ;;  %v1372_v26 = vshrl.u32 %v2397_v59, %v1369_v36  ;;  %v1228_v13 = vcvt.s32.f32 %v1221_v5  ;;  %v1375_v7 = vshrl.u32 %v2398_v61, %v1369_v36 }
 0x1a7   : > { %1987 = vst [vmem:[%s2768_s8 + $0x48] sm:$0xff] %v1353_v12  ;;  %v1226_v18 = vand.u32 2147483647, %v1225_v27  ;;  %v288_v19 = vmul.f32 %v3048_v3, %v257_v48  ;;  %v1520_v41 = vshrl.u32 %v1519_v23, 30  ;;  %v1371_v24 = vshll.u32 %v2396_v55, %v1368_v62 }
 0x1a8   : > { %v1378_v25 = vshrl.u32 %v2399_v63, %v1369_v36  ;;  %v1381_v29 = vshrl.u32 %v2400_v1, %v1369_v36  ;;  %v1367_v39 = vshrl.u32 %v1366_v60, 5  ;;  %v1374_v52 = vshll.u32 %v2397_v59, %v1368_v62 }
 0x1a9   : > { %v1229_v2 = vmul.f32 %v1228_v13, %v1226_v18  ;;  %v1380_v54 = vshll.u32 %v2399_v63, %v1368_v62  ;;  %v1521_v44 = vshll.u32 %v1520_v41, 30  ;;  %v1373_v58 = vor.u32 %v1372_v26, %v1371_v24 }
 0x1aa   : > { %v1377_v16 = vshll.u32 %v2398_v61, %v1368_v62  ;;  %v1384_v30 = vshrl.u32 %v2401_v8, %v1369_v36  ;;  %v1376_v11 = vor.u32 %v1375_v7, %v1374_v52  ;;  %v1383_v6 = vshll.u32 %v2400_v1, %v1368_v62 }
 0x1ab   : > { %v1230_v3 = vxor.u32 2147483648, %v1229_v2  ;;  %v1382_v49 = vor.u32 %v1381_v29, %v1380_v54  ;;  %v3362_v51 = vsub.s32 %v1518_v34, %v1521_v44  ;;  %v3364_v42 = vshll.u32 %v1362_v4, 8 }
 0x1ac   : > { %v1379_v32 = vor.u32 %v1378_v25, %v1377_v16  ;;  %v3372_v43 = vadd.f32 %v3369_v38, %v288_v19  ;;  %v1370_v60 = vshrl.u32 %v2396_v55, %v1369_v36  ;;  %v1385_v15 = vor.u32 %v1384_v30, %v1383_v6 }
 0x1ad   : > { %v1231_v45 = vsel %vm1148_vm8, %v1230_v3, %v1229_v2  ;;  %vm1386_vm5 = vcmp.lt.s32.totalorder %v1367_v39, 1  ;;  %v1524_v46 = vsub.s32 0, %v3362_v51  ;;  %vm1387_vm6 = vcmp.lt.s32.totalorder %v1367_v39, 2 }
 0x1ae   : > { %v1234_v50 = vsel %vm3309_vm12, %v3123_v28, %v1231_v45  ;;  %vm1389_vm7 = vcmp.lt.s32.totalorder %v1367_v39, 4  ;;  %vm1388_vm10 = vcmp.lt.s32.totalorder %v1367_v39, 3  ;;  %v1394_v9 = vsel %vm1386_vm5, %v1373_v58, %v1376_v11 }
 0x1af   : > { %2299 = vcosq.f32 %v1234_v50  ;;  %v1395_v56 = vsel %vm1389_vm7, %v1382_v49, 920167782  ;;  %v2124_v14 = vmin.u32 %v1524_v46, %v3362_v51  ;;  %v1391_v47 = vsel %vm1389_vm7, %v1379_v32, 2102212464 }
 0x1b0   : > { %2301 = vsinq.f32 %v1234_v50  ;;  %v1396_v62 = vsel %vm1388_vm10, %v1379_v32, %v1395_v56  ;;  %v1544_v17 = vsub.s32 4, %v1520_v41  ;;  %v1398_v22 = vsel %vm1386_vm5, %v1376_v11, %v1379_v32 }
 0x1b1   : > { %v1397_v5 = vsel %vm1387_vm6, %v1394_v9, %v1396_v62  ;;  %v1399_v21 = vsel %vm1389_vm7, %v1385_v15, 1326507024  ;;  %v1240_v31 = vand.u32 3, %v1239_v0  ;;  %v1526_v10 = vclz %v2124_v14 }
 0x1b2   : > { %v1390_v34 = vsel %vm1386_vm5, %v1370_v60, %v1373_v58  ;;  %v1392_v36 = vsel %vm1388_vm10, %v1376_v11, %v1391_v47  ;;  %v1400_v48 = vsel %vm1388_vm10, %v1382_v49, %v1399_v21  ;;  %vm1460_vm8 = vcmp.lt.s32.totalorder %v3232_v37, 0 }
 0x1b3   : > { %v3387_v35 = vmul.u32.u64.low %v3364_v42, %v1397_v5  ;;  %v3388_v27 = vmul.u32.u64.high %v3364_v42, %v1397_v5, %v3387_v35  ;;  %v2125_v12 = vadd.s32 4294967294, %v1526_v10  ;;  %v1401_v23 = vsel %vm1387_vm6, %v1398_v22, %v1400_v48  ;;  %v3425_v5 = vld [vmem:[%s3786_s1] ss:$0 sm:$0xff] }
 0x1b4   : > { %v1669_v4 = vand.u32 2139095040, %v3372_v43  ;;  %v1545_v26 = vsel %vm1460_vm8, %v1544_v17, %v1520_v41  ;;  %v3396_v0 = vmul.u32.u64.low %v3364_v42, %v1401_v23  ;;  %v3397_v18 = vmul.u32.u64.high %v3364_v42, %v1401_v23, %v3396_v0 }
 0x1b5   : > { %vm1238_vm9 = vweird.f32 %v3123_v28  ;;  %vm3402_vm12 = vcmp.le.f32.partialorder %v1458_v57, 0.7853982  ;;  %vm2126_vm11 = vcmp.lt.s32.totalorder %v2125_v12, 0  ;;  %v1393_v7 = vsel %vm1387_vm6, %v1390_v34, %v1392_v36 }
 0x1b6   : > { %v1670_v19 = vshrl.u32 %v1669_v4, 23  ;;  %vm1241_vm13 = vcmp.lt.s32.totalorder %v1240_v31, 2  ;;  %v1514_v41 = vadd.s32 %v3323_v40, %v3328_v33  ;;  %v1529_v24 = vsel %vm2126_vm11, 0, %v2125_v12 }
 0x1b7   : > { %v1412_v25 = vadd.s32 1, %v3388_v27  ;;  %v1530_v29 = vsub.s32 32, %v1529_v24  ;;  %v1534_v2 = vsub.s32 4294967266, %v1529_v24  ;;  %v1547_v52 = vsel %vm3402_vm12, 0, %v1545_v26 }
 0x1b8   : > { %v2131_v57 = vadd.s32 4294967169, %v1670_v19  ;;  %v1531_v44 = vshll.u32 %v3362_v51, %v1529_v24  ;;  %v1409_v39 = vmul.u32 %v3364_v42, %v1393_v7  ;;  %vm1411_vm14 = vc.u32 %v3397_v18, %v3387_v35  ;;  %v252_v42 = vpop.permute.xlu0 %251 }
 0x1b9   : > { %v2300_v54 = vpop.eup %2299  ;;  %v1666_v58 = vand.u32 2147483647, %v3372_v43  ;;  %v1532_v33 = vshrl.u32 %v1514_v41, %v1530_v29  ;;  %v1535_v30 = vadd.s32 127, %v1534_v2  ;;  %v1413_v3 = vsel %vm1411_vm14, %v1412_v25, %v3388_v27 }
 0x1ba   : > { %v2302_v16 = vpop.eup %2301  ;;  %v1246_v40 = vxor.u32 2147483648, %v2300_v54  ;;  %vm1245_vm0 = vcmp.eq.s32.totalorder %v1240_v31, 2  ;;  %v1414_v49 = vadd.s32 %v1413_v3, %v1409_v39  ;;  %v1676_v6 = vadd.s32 1, %v2131_v57 }
 0x1bb   : > { %v1243_v11 = vxor.u32 2147483648, %v2302_v16  ;;  %vm1242_vm15 = vcmp.eq.s32.totalorder %v1240_v31, 0  ;;  %v1533_v45 = vor.u32 %v1532_v33, %v1531_v44  ;;  %v1536_v51 = vshll.u32 %v1535_v30, 23 }
 0x1bc   : > { %v1247_v32 = vsel %vm1245_vm0, %v1246_v40, %v2302_v16  ;;  %v1551_v15 = vadd.s32 3, %v1547_v52  ;;  %v1415_v50 = vadd.s32 536870912, %v1414_v49  ;;  %vm1677_vm1 = vcmp.gt.s32.totalorder %v1676_v6, 0 }
 0x1bd   : > { %v1244_v60 = vsel %vm1242_vm15, %v2300_v54, %v1243_v11  ;;  %v1537_v9 = vor.u32 4788187, %v1536_v51  ;;  %v1673_v56 = vand.u32 8388607, %v1666_v58  ;;  %v1678_v14 = vsel %vm1677_vm1, %v1676_v6, 0 }
 0x1be   : > { %v1248_v46 = vsel %vm1241_vm13, %v1244_v60, %v1247_v32  ;;  %v1416_v62 = vshrl.u32 %v1415_v50, 30  ;;  %v1680_v17 = vand.u32 31, %v1678_v14  ;;  %v287_v22 = vmul.f32 %v3425_v5, %v252_v42 }
 0x1bf   : > { %v1249_v47 = vsel %vm1238_vm9, nan, %v1248_v46  ;;  %v1538_v21 = vand.u32 2147483647, %v1537_v9  ;;  %v1540_v31 = vcvt.s32.f32 %v1533_v45  ;;  %vm1356_vm2 = vcmp.lt.s32.totalorder %v3262_v20, 0 }
 0x1c0   : > { %1986 = vst [vmem:[%s2768_s8 + $0x40] sm:$0xff] %v1249_v47  ;;  %v1417_v10 = vshll.u32 %v1416_v62, 30  ;;  %v1681_v34 = vsub.s32 32, %v1680_v17  ;;  %v3430_v48 = vand.u32 3, %v1551_v15  ;;  %v1410_v28 = vadd.s32 %v3387_v35, %v3397_v18 }
 0x1c1   : > { %v1541_v36 = vmul.f32 %v1540_v31, %v1538_v21  ;;  %v1674_v27 = vor.u32 8388608, %v1673_v56  ;;  %v3435_v23 = vshrl.u32 %v1678_v14, 5  ;;  %v3439_v26 = vadd.f32 %v3369_v38, %v287_v22 }
 0x1c2   : > { %v3433_v12 = vsub.s32 %v1414_v49, %v1417_v10  ;;  %v1684_v4 = vshrl.u32 %v2397_v59, %v1681_v34  ;;  %v1683_v7 = vshll.u32 %v2396_v55, %v1680_v17  ;;  %v1687_v19 = vshrl.u32 %v2398_v61, %v1681_v34 }
 0x1c3   : > { %v1542_v0 = vxor.u32 2147483648, %v1541_v36  ;;  %v1690_v41 = vshrl.u32 %v2399_v63, %v1681_v34  ;;  %v1686_v35 = vshll.u32 %v2397_v59, %v1680_v17  ;;  %v1689_v18 = vshll.u32 %v2398_v61, %v1680_v17 }
 0x1c4   : > { %v1420_v24 = vsub.s32 0, %v3433_v12  ;;  %v1693_v25 = vshrl.u32 %v2400_v1, %v1681_v34  ;;  %v1440_v2 = vsub.s32 4, %v1416_v62  ;;  %v1685_v52 = vor.u32 %v1684_v4, %v1683_v7 }
 0x1c5   : > { %v1543_v29 = vsel %vm1460_vm8, %v1542_v0, %v1541_v36  ;;  %v1692_v57 = vshll.u32 %v2399_v63, %v1680_v17  ;;  %v1688_v39 = vor.u32 %v1687_v19, %v1686_v35  ;;  %v1691_v16 = vor.u32 %v1690_v41, %v1689_v18 }
 0x1c6   : > { %v1546_v54 = vsel %vm3402_vm12, %v3232_v37, %v1543_v29  ;;  %v2120_v44 = vmin.u32 %v1420_v24, %v3433_v12  ;;  %v1695_v33 = vshll.u32 %v2400_v1, %v1680_v17  ;;  %v1696_v30 = vshrl.u32 %v2401_v8, %v1681_v34 }
 0x1c7   : > { %2303 = vcosq.f32 %v1546_v54  ;;  %v1694_v40 = vor.u32 %v1693_v25, %v1692_v57  ;;  %vm3459_vm3 = vcmp.le.f32.partialorder %v1354_v53, 0.7853982  ;;  %v3463_v13 = vshll.u32 %v1674_v27, 8 }
 0x1c8   : > { %2305 = vsinq.f32 %v1546_v54  ;;  %v1422_v11 = vclz %v2120_v44  ;;  %v1565_v49 = vand.u32 2139095040, %v3439_v26  ;;  %v1441_v6 = vsel %vm1356_vm2, %v1440_v2, %v1416_v62 }
 0x1c9   : > { %v1682_v32 = vshrl.u32 %v2396_v55, %v1681_v34  ;;  %v1697_v45 = vor.u32 %v1696_v30, %v1695_v33  ;;  %vm1698_vm4 = vcmp.lt.s32.totalorder %v3435_v23, 1  ;;  %vm1700_vm5 = vcmp.lt.s32.totalorder %v3435_v23, 3  ;;  %v267_v30 = vpop.permute.xlu1 %266 }
 0x1ca   : > { %v2121_v51 = vadd.s32 4294967294, %v1422_v11  ;;  %vm1701_vm6 = vcmp.lt.s32.totalorder %v3435_v23, 4  ;;  %v1706_v53 = vsel %vm1698_vm4, %v1685_v52, %v1688_v39  ;;  %v1710_v15 = vsel %vm1698_vm4, %v1688_v39, %v1691_v16 }
 0x1cb   : > { %v1703_v42 = vsel %vm1701_vm6, %v1691_v16, 2102212464  ;;  %v1707_v60 = vsel %vm1701_vm6, %v1694_v40, 920167782  ;;  %v1711_v50 = vsel %vm1701_vm6, %v1697_v45, 1326507024  ;;  %v1702_v14 = vsel %vm1698_vm4, %v1682_v32, %v1685_v52 }
 0x1cc   : > { %vm2122_vm7 = vcmp.lt.s32.totalorder %v2121_v51, 0  ;;  %vm1699_vm10 = vcmp.lt.s32.totalorder %v3435_v23, 2  ;;  %v1708_v46 = vsel %vm1700_vm5, %v1691_v16, %v1707_v60  ;;  %v1712_v9 = vsel %vm1700_vm5, %v1694_v40, %v1711_v50 }
 0x1cd   : > { %vm1553_vm8 = vcmp.lt.s32.totalorder %v3430_v48, 2  ;;  %v1425_v56 = vsel %vm2122_vm7, 0, %v2121_v51  ;;  %v1709_v47 = vsel %vm1699_vm10, %v1706_v53, %v1708_v46  ;;  %v1713_v62 = vsel %vm1699_vm10, %v1710_v15, %v1712_v9 }
 0x1ce   : > { %vm1550_vm9 = vweird.f32 %v3232_v37  ;;  %v1426_v17 = vsub.s32 32, %v1425_v56  ;;  %v1430_v22 = vsub.s32 4294967266, %v1425_v56  ;;  %v1704_v21 = vsel %vm1700_vm5, %v1688_v39, %v1703_v42 }
 0x1cf   : > { %v1566_v31 = vshrl.u32 %v1565_v49, 23  ;;  %v3486_v10 = vmul.u32.u64.low %v3463_v13, %v1713_v62  ;;  %v3487_v34 = vmul.u32.u64.high %v3463_v13, %v1713_v62, %v3486_v10  ;;  %v1427_v4 = vshll.u32 %v3433_v12, %v1425_v56 }
 0x1d0   : > { %v3490_v36 = vmul.u32.u64.low %v3463_v13, %v1709_v47  ;;  %v3491_v27 = vmul.u32.u64.high %v3463_v13, %v1709_v47, %v3490_v36  ;;  %v1428_v0 = vshrl.u32 %v1410_v28, %v1426_v17  ;;  %v1431_v7 = vadd.s32 127, %v1430_v22 }
 0x1d1   : > { %v2127_v19 = vadd.s32 4294967169, %v1566_v31  ;;  %v2304_v41 = vpop.eup %2303  ;;  %vm1554_vm12 = vcmp.eq.s32.totalorder %v3430_v48, 0  ;;  %vm1557_vm11 = vcmp.eq.s32.totalorder %v3430_v48, 2  ;;  %v1443_v24 = vsel %vm3459_vm3, 0, %v1441_v6 }
 0x1d2   : > { %v1705_v35 = vsel %vm1699_vm10, %v1702_v14, %v1704_v21  ;;  %v2306_v18 = vpop.eup %2305  ;;  %v1558_v25 = vxor.u32 2147483648, %v2304_v41  ;;  %v1429_v29 = vor.u32 %v1428_v0, %v1427_v4  ;;  %v1432_v2 = vshll.u32 %v1431_v7, 23 }
 0x1d3   : > { %v1572_v52 = vadd.s32 1, %v2127_v19  ;;  %v1555_v12 = vxor.u32 2147483648, %v2306_v18  ;;  %vm1723_vm13 = vc.u32 %v3487_v34, %v3490_v36  ;;  %v1724_v28 = vadd.s32 1, %v3491_v27 }
 0x1d4   : > { %v1562_v57 = vand.u32 2147483647, %v3439_v26  ;;  %v1559_v54 = vsel %vm1557_vm11, %v1558_v25, %v2306_v18  ;;  %v1433_v44 = vor.u32 4788187, %v1432_v2  ;;  %v1721_v39 = vmul.u32 %v3463_v13, %v1705_v35 }
 0x1d5   : > { %vm1573_vm14 = vcmp.gt.s32.totalorder %v1572_v52, 0  ;;  %v1556_v23 = vsel %vm1554_vm12, %v2304_v41, %v1555_v12  ;;  %v1447_v16 = vadd.s32 3, %v1443_v24  ;;  %v1725_v40 = vsel %vm1723_vm13, %v1724_v28, %v3491_v27 }
 0x1d6   : > { %v1574_v33 = vsel %vm1573_vm14, %v1572_v52, 0  ;;  %v1560_v11 = vsel %vm1553_vm8, %v1556_v23, %v1559_v54  ;;  %v1434_v49 = vand.u32 2147483647, %v1433_v44  ;;  %v1436_v6 = vcvt.s32.f32 %v1429_v29 }
 0x1d7   : > { %v1726_v32 = vadd.s32 %v1725_v40, %v1721_v39  ;;  %v1561_v45 = vsel %vm1550_vm9, nan, %v1560_v11  ;;  %v1576_v51 = vand.u32 31, %v1574_v33  ;;  %v290_v42 = vmul.f32 %v3425_v5, %v267_v30 }
 0x1d8   : > { %1989 = vst [vmem:[%s2768_s8 + $0x58] sm:$0xff] %v1561_v45  ;;  %v1437_v13 = vmul.f32 %v1436_v6, %v1434_v49  ;;  %v3515_v60 = vand.u32 3, %v1447_v16  ;;  %v1569_v15 = vand.u32 8388607, %v1562_v57  ;;  %v1575_v50 = vshrl.u32 %v1574_v33, 5  ;;  %v262_v6 = vpop.permute.xlu0 %261 }
 0x1d9   : > { %v1727_v53 = vadd.s32 536870912, %v1726_v32  ;;  %v1577_v48 = vsub.s32 32, %v1576_v51  ;;  %v1579_v56 = vshll.u32 %v2396_v55, %v1576_v51  ;;  %v1582_v37 = vshll.u32 %v2397_v59, %v1576_v51 }
 0x1da   : > { %v1438_v46 = vxor.u32 2147483648, %v1437_v13  ;;  %v1585_v62 = vshll.u32 %v2398_v61, %v1576_v51  ;;  %v1588_v31 = vshll.u32 %v2399_v63, %v1576_v51  ;;  %v1570_v41 = vor.u32 8388608, %v1569_v15 }
 0x1db   : > { %v3519_v9 = vshrl.u32 %v1727_v53, 30  ;;  %v1580_v14 = vshrl.u32 %v2397_v59, %v1577_v48  ;;  %v1583_v47 = vshrl.u32 %v2398_v61, %v1577_v48  ;;  %v1586_v17 = vshrl.u32 %v2399_v63, %v1577_v48 }
 0x1dc   : > { %v1439_v22 = vsel %vm1356_vm2, %v1438_v46, %v1437_v13  ;;  %v1589_v10 = vshrl.u32 %v2400_v1, %v1577_v48  ;;  %v1591_v35 = vshll.u32 %v2400_v1, %v1576_v51  ;;  %v1592_v18 = vshrl.u32 %v2401_v8, %v1577_v48 }
 0x1dd   : > { %v1729_v21 = vshll.u32 %v3519_v9, 30  ;;  %v1442_v27 = vsel %vm3459_vm3, %v3262_v20, %v1439_v22  ;;  %v1581_v4 = vor.u32 %v1580_v14, %v1579_v56  ;;  %v1584_v0 = vor.u32 %v1583_v47, %v1582_v37 }
 0x1de   : > { %v1587_v7 = vor.u32 %v1586_v17, %v1585_v62  ;;  %2307 = vcosq.f32 %v1442_v27  ;;  %v1590_v24 = vor.u32 %v1589_v10, %v1588_v31  ;;  %v3540_v25 = vadd.f32 %v3369_v38, %v290_v42 }
 0x1df   : > { %v3535_v19 = vsub.s32 %v1726_v32, %v1729_v21  ;;  %2309 = vsinq.f32 %v1442_v27  ;;  %vm1668_vm0 = vcmp.lt.s32.totalorder %v3372_v43, 0  ;;  %vm1594_vm15 = vcmp.lt.s32.totalorder %v1575_v50, 1 }
 0x1e0   : > { %vm1596_vm1 = vcmp.lt.s32.totalorder %v1575_v50, 3  ;;  %vm1597_vm2 = vcmp.lt.s32.totalorder %v1575_v50, 4  ;;  %v1593_v29 = vor.u32 %v1592_v18, %v1591_v35  ;;  %v1602_v52 = vsel %vm1594_vm15, %v1581_v4, %v1584_v0 }
 0x1e1   : > { %v1732_v3 = vsub.s32 0, %v3535_v19  ;;  %v1599_v2 = vsel %vm1597_vm2, %v1587_v7, 2102212464  ;;  %v1603_v12 = vsel %vm1597_vm2, %v1590_v24, 920167782  ;;  %v1578_v54 = vshrl.u32 %v2396_v55, %v1577_v48 }
 0x1e2   : > { %vm1595_vm3 = vcmp.lt.s32.totalorder %v1575_v50, 2  ;;  %v1604_v44 = vsel %vm1596_vm1, %v1587_v7, %v1603_v12  ;;  %v1606_v23 = vsel %vm1594_vm15, %v1584_v0, %v1587_v7  ;;  %v1607_v16 = vsel %vm1597_vm2, %v1593_v29, 1326507024 }
 0x1e3   : > { %v2132_v28 = vmin.u32 %v1732_v3, %v3535_v19  ;;  %v1605_v39 = vsel %vm1595_vm3, %v1602_v52, %v1604_v44  ;;  %v1610_v40 = vshll.u32 %v1570_v41, 8  ;;  %vm1449_vm4 = vcmp.lt.s32.totalorder %v3515_v60, 2 }
 0x1e4   : > { %vm1450_vm5 = vcmp.eq.s32.totalorder %v3515_v60, 0  ;;  %vm3554_vm6 = vcmp.le.f32.partialorder %v1666_v58, 0.7853982  ;;  %v1598_v11 = vsel %vm1594_vm15, %v1578_v54, %v1581_v4  ;;  %v1600_v49 = vsel %vm1596_vm1, %v1584_v0, %v1599_v2 }
 0x1e5   : > { %v1734_v30 = vclz %v2132_v28  ;;  %vm1446_vm7 = vweird.f32 %v3262_v20  ;;  %v1752_v32 = vsub.s32 4, %v3519_v9  ;;  %v1608_v45 = vsel %vm1596_vm1, %v1590_v24, %v1607_v16 }
 0x1e6   : > { %v3563_v51 = vmul.u32.u64.low %v1610_v40, %v1605_v39  ;;  %v3564_v13 = vmul.u32.u64.high %v1610_v40, %v1605_v39, %v3563_v51  ;;  %vm1453_vm10 = vcmp.eq.s32.totalorder %v3515_v60, 2  ;;  %v1609_v53 = vsel %vm1595_vm3, %v1606_v23, %v1608_v45 }
 0x1e7   : > { %v2133_v58 = vadd.s32 4294967294, %v1734_v30  ;;  %v1877_v42 = vand.u32 2139095040, %v3540_v25  ;;  %v1601_v15 = vsel %vm1595_vm3, %v1598_v11, %v1600_v49  ;;  %v289_v56 = vmul.f32 %v3425_v5, %v262_v6 }
 0x1e8   : > { %v3571_v48 = vmul.u32.u64.low %v1610_v40, %v1609_v53  ;;  %v3572_v46 = vmul.u32.u64.high %v1610_v40, %v1609_v53, %v3571_v48  ;;  %v2308_v37 = vpop.eup %2307  ;;  %v1722_v14 = vadd.s32 %v3490_v36, %v3487_v34  ;;  %v1874_v47 = vand.u32 2147483647, %v3540_v25 }
 0x1e9   : > { %vm2134_vm8 = vcmp.lt.s32.totalorder %v2133_v58, 0  ;;  %v1878_v62 = vshrl.u32 %v1877_v42, 23  ;;  %v2310_v17 = vpop.eup %2309  ;;  %v1454_v22 = vxor.u32 2147483648, %v2308_v37  ;;  %v1753_v50 = vsel %vm1668_vm0, %v1752_v32, %v3519_v9 }
 0x1ea   : > { %v1737_v21 = vsel %vm2134_vm8, 0, %v2133_v58  ;;  %v1620_v31 = vadd.s32 1, %v3564_v13  ;;  %v1451_v10 = vxor.u32 2147483648, %v2310_v17  ;;  %v1617_v4 = vmul.u32 %v1610_v40, %v1601_v15 }
 0x1eb   : > { %v1738_v27 = vsub.s32 32, %v1737_v21  ;;  %v1742_v5 = vsub.s32 4294967266, %v1737_v21  ;;  %v1455_v34 = vsel %vm1453_vm10, %v1454_v22, %v2310_v17  ;;  %v1739_v36 = vshll.u32 %v3535_v19, %v1737_v21 }
 0x1ec   : > { %vm1619_vm9 = vc.u32 %v3572_v46, %v3563_v51  ;;  %v2139_v0 = vadd.s32 4294967169, %v1878_v62  ;;  %v1452_v7 = vsel %vm1450_vm5, %v2308_v37, %v1451_v10  ;;  %v1755_v18 = vsel %vm3554_vm6, 0, %v1753_v50 }
 0x1ed   : > { %v1740_v9 = vshrl.u32 %v1722_v14, %v1738_v27  ;;  %v1743_v41 = vadd.s32 127, %v1742_v5  ;;  %v1621_v24 = vsel %vm1619_vm9, %v1620_v31, %v3564_v13  ;;  %v1456_v35 = vsel %vm1449_vm4, %v1452_v7, %v1455_v34 }
 0x1ee   : > { %v1622_v3 = vadd.s32 %v1621_v24, %v1617_v4  ;;  %v1884_v29 = vadd.s32 1, %v2139_v0  ;;  %v1457_v19 = vsel %vm1446_vm7, nan, %v1456_v35  ;;  %v1759_v54 = vadd.s32 3, %v1755_v18 }
 0x1ef   : > { %v1741_v2 = vor.u32 %v1740_v9, %v1739_v36  ;;  %v1744_v52 = vshll.u32 %v1743_v41, 23  ;;  %1988 = vst [vmem:[%s2768_s8 + $0x50] sm:$0xff] %v1457_v19  ;;  %v1881_v60 = vand.u32 8388607, %v1874_v47  ;;  %v3602_v16 = vadd.f32 %v3369_v38, %v289_v56 }
 0x1f0   : > { %v1623_v12 = vadd.s32 536870912, %v1622_v3  ;;  %vm1885_vm12 = vcmp.gt.s32.totalorder %v1884_v29, 0  ;;  %v3605_v6 = vand.u32 3, %v1759_v54  ;;  %v1618_v36 = vadd.s32 %v3563_v51, %v3572_v46 }
 0x1f1   : > { %v1745_v28 = vor.u32 4788187, %v1744_v52  ;;  %v1886_v44 = vsel %vm1885_vm12, %v1884_v29, 0  ;;  %v1748_v20 = vcvt.s32.f32 %v1741_v2  ;;  %v1882_v45 = vor.u32 8388608, %v1881_v60 }
 0x1f2   : > { %v3597_v39 = vshrl.u32 %v1623_v12, 30  ;;  %v1888_v23 = vand.u32 31, %v1886_v44  ;;  %v1773_v58 = vand.u32 2139095040, %v3602_v16  ;;  %v1887_v17 = vshrl.u32 %v1886_v44, 5 }
 0x1f3   : > { %v1746_v40 = vand.u32 2147483647, %v1745_v28  ;;  %v1922_v7 = vshll.u32 %v1882_v45, 8  ;;  %vm1761_vm2 = vcmp.lt.s32.totalorder %v3605_v6, 2  ;;  %vm1758_vm3 = vweird.f32 %v3372_v43 }
 0x1f4   : > { %v1625_v30 = vshll.u32 %v3597_v39, 30  ;;  %v1889_v11 = vsub.s32 32, %v1888_v23  ;;  %v1891_v42 = vshll.u32 %v2396_v55, %v1888_v23  ;;  %v1894_v56 = vshll.u32 %v2397_v59, %v1888_v23 }
 0x1f5   : > { %v1749_v49 = vmul.f32 %v1748_v20, %v1746_v40  ;;  %v1897_v37 = vshll.u32 %v2398_v61, %v1888_v23  ;;  %v1900_v21 = vshll.u32 %v2399_v63, %v1888_v23  ;;  %v1903_v4 = vshll.u32 %v2400_v1, %v1888_v23 }
 0x1f6   : > { %v3607_v32 = vsub.s32 %v1622_v3, %v1625_v30  ;;  %v1892_v13 = vshrl.u32 %v2397_v59, %v1889_v11  ;;  %v1895_v38 = vshrl.u32 %v2398_v61, %v1889_v11  ;;  %v1898_v15 = vshrl.u32 %v2399_v63, %v1889_v11 }
 0x1f7   : > { %v1750_v53 = vxor.u32 2147483648, %v1749_v49  ;;  %v1901_v14 = vshrl.u32 %v2400_v1, %v1889_v11  ;;  %v1904_v34 = vshrl.u32 %v2401_v8, %v1889_v11  ;;  %v1890_v9 = vshrl.u32 %v2396_v55, %v1889_v11 }
 0x1f8   : > { %v1628_v48 = vsub.s32 0, %v3607_v32  ;;  %v1893_v22 = vor.u32 %v1892_v13, %v1891_v42  ;;  %v1896_v10 = vor.u32 %v1895_v38, %v1894_v56  ;;  %v1899_v27 = vor.u32 %v1898_v15, %v1897_v37 }
 0x1f9   : > { %v1751_v62 = vsel %vm1668_vm0, %v1750_v53, %v1749_v49  ;;  %v1902_v5 = vor.u32 %v1901_v14, %v1900_v21  ;;  %v1905_v33 = vor.u32 %v1904_v34, %v1903_v4  ;;  %vm1906_vm11 = vcmp.lt.s32.totalorder %v1887_v17, 1 }
 0x1fa   : > { %v1754_v50 = vsel %vm3554_vm6, %v3372_v43, %v1751_v62  ;;  %v2128_v31 = vmin.u32 %v1628_v48, %v3607_v32  ;;  %v1774_v41 = vshrl.u32 %v1773_v58, 23  ;;  %vm1908_vm13 = vcmp.lt.s32.totalorder %v1887_v17, 3 }
 0x1fb   : > { %2311 = vcosq.f32 %v1754_v50  ;;  %vm1909_vm14 = vcmp.lt.s32.totalorder %v1887_v17, 4  ;;  %v1914_v35 = vsel %vm1906_vm11, %v1893_v22, %v1896_v10  ;;  %v1918_v29 = vsel %vm1906_vm11, %v1896_v10, %v1899_v27 }
 0x1fc   : > { %2313 = vsinq.f32 %v1754_v50  ;;  %v1630_v0 = vclz %v2128_v31  ;;  %v1911_v18 = vsel %vm1909_vm14, %v1899_v27, 2102212464  ;;  %v1915_v3 = vsel %vm1909_vm14, %v1902_v5, 920167782 }
 0x1fd   : > { %v1919_v19 = vsel %vm1909_vm14, %v1905_v33, 1326507024  ;;  %vm1564_vm0 = vcmp.lt.s32.totalorder %v3439_v26, 0  ;;  %vm1907_vm1 = vcmp.lt.s32.totalorder %v1887_v17, 2  ;;  %v1916_v51 = vsel %vm1908_vm13, %v1899_v27, %v1915_v3 }
 0x1fe   : > { %v2129_v24 = vadd.s32 4294967294, %v1630_v0  ;;  %v1920_v46 = vsel %vm1908_vm13, %v1902_v5, %v1919_v19  ;;  %v1910_v52 = vsel %vm1906_vm11, %v1890_v9, %v1893_v22  ;;  %v1917_v12 = vsel %vm1907_vm1, %v1914_v35, %v1916_v51 }
 0x1ff   : > { %v1921_v28 = vsel %vm1907_vm1, %v1918_v29, %v1920_v46  ;;  %v1912_v60 = vsel %vm1908_vm13, %v1896_v10, %v1911_v18  ;;  %v2135_v23 = vadd.s32 4294967169, %v1774_v41  ;;  %vm1762_vm4 = vcmp.eq.s32.totalorder %v3605_v6, 0 }
 0x200   : > { %vm2130_vm15 = vcmp.lt.s32.totalorder %v2129_v24, 0  ;;  %v3641_v40 = vmul.u32.u64.low %v1922_v7, %v1921_v28  ;;  %v3642_v20 = vmul.u32.u64.high %v1922_v7, %v1921_v28, %v3641_v40  ;;  %vm1765_vm5 = vcmp.eq.s32.totalorder %v3605_v6, 2 }
 0x201   : > { %v1633_v2 = vsel %vm2130_vm15, 0, %v2129_v24  ;;  %v3644_v30 = vmul.u32.u64.low %v1922_v7, %v1917_v12  ;;  %v3645_v11 = vmul.u32.u64.high %v1922_v7, %v1917_v12, %v3644_v30  ;;  %v1780_v58 = vadd.s32 1, %v2135_v23 }
 0x202   : > { %v1634_v54 = vsub.s32 32, %v1633_v2  ;;  %v1638_v44 = vsub.s32 4294967266, %v1633_v2  ;;  %v1635_v49 = vshll.u32 %v3607_v32, %v1633_v2  ;;  %v1648_v42 = vsub.s32 4, %v3597_v39 }
 0x203   : > { %v1913_v38 = vsel %vm1907_vm1, %v1910_v52, %v1912_v60  ;;  %vm1781_vm6 = vcmp.gt.s32.totalorder %v1780_v58, 0  ;;  %vm1931_vm7 = vc.u32 %v3642_v20, %v3644_v30  ;;  %v1932_v32 = vadd.s32 1, %v3645_v11 }
 0x204   : > { %v1636_v45 = vshrl.u32 %v1618_v36, %v1634_v54  ;;  %v1639_v13 = vadd.s32 127, %v1638_v44  ;;  %v1770_v62 = vand.u32 2147483647, %v3602_v16  ;;  %v1929_v50 = vmul.u32 %v1922_v7, %v1913_v38 }
 0x205   : > { %v2312_v53 = vpop.eup %2311  ;;  %v1782_v31 = vsel %vm1781_vm6, %v1780_v58, 0  ;;  %v1649_v10 = vsel %vm1564_vm0, %v1648_v42, %v3597_v39  ;;  %v1933_v27 = vsel %vm1931_vm7, %v1932_v32, %v3645_v11  ;;  %vm3669_vm10 = vcmp.le.f32.partialorder %v1562_v57, 0.7853982 }
 0x206   : > { %v2314_v15 = vpop.eup %2313  ;;  %v1766_v48 = vxor.u32 2147483648, %v2312_v53  ;;  %v1637_v56 = vor.u32 %v1636_v45, %v1635_v49  ;;  %v1640_v37 = vshll.u32 %v1639_v13, 23  ;;  %v1784_v5 = vand.u32 31, %v1782_v31 }
 0x207   : > { %v1763_v14 = vxor.u32 2147483648, %v2314_v15  ;;  %v1934_v0 = vadd.s32 %v1933_v27, %v1929_v50  ;;  %v1777_v39 = vand.u32 8388607, %v1770_v62  ;;  %v1651_v6 = vsel %vm3669_vm10, 0, %v1649_v10 }
 0x208   : > { %v1767_v22 = vsel %vm1765_vm5, %v1766_v48, %v2314_v15  ;;  %v1641_v21 = vor.u32 4788187, %v1640_v37  ;;  %v1644_v36 = vcvt.s32.f32 %v1637_v56  ;;  %v1785_v33 = vsub.s32 32, %v1784_v5 }
 0x209   : > { %v1764_v17 = vsel %vm1762_vm4, %v2312_v53, %v1763_v14  ;;  %v1935_v24 = vadd.s32 536870912, %v1934_v0  ;;  %v1783_v35 = vshrl.u32 %v1782_v31, 5  ;;  %v1787_v43 = vshll.u32 %v2396_v55, %v1784_v5 }
 0x20a   : > { %v1768_v4 = vsel %vm1761_vm2, %v1764_v17, %v1767_v22  ;;  %v1642_v34 = vand.u32 2147483647, %v1641_v21  ;;  %v1788_v18 = vshrl.u32 %v2397_v59, %v1785_v33  ;;  %v1790_v57 = vshll.u32 %v2397_v59, %v1784_v5 }
 0x20b   : > { %v1769_v7 = vsel %vm1758_vm3, nan, %v1768_v4  ;;  %v1791_v3 = vshrl.u32 %v2398_v61, %v1785_v33  ;;  %v3682_v19 = vshrl.u32 %v1935_v24, 30  ;;  %v1794_v51 = vshrl.u32 %v2399_v63, %v1785_v33 }
 0x20c   : > { %1991 = vst [vmem:[%s2768_s8 + $0x68] sm:$0xff] %v1769_v7  ;;  %v1645_v41 = vmul.f32 %v1644_v36, %v1642_v34  ;;  %v1797_v46 = vshrl.u32 %v2400_v1, %v1785_v33  ;;  %v1793_v2 = vshll.u32 %v2398_v61, %v1784_v5  ;;  %v1796_v52 = vshll.u32 %v2399_v63, %v1784_v5 }
 0x20d   : > { %v1799_v12 = vshll.u32 %v2400_v1, %v1784_v5  ;;  %v1800_v28 = vshrl.u32 %v2401_v8, %v1785_v33  ;;  %v1937_v54 = vshll.u32 %v3682_v19, 30  ;;  %v1789_v44 = vor.u32 %v1788_v18, %v1787_v43 }
 0x20e   : > { %v1646_v29 = vxor.u32 2147483648, %v1645_v41  ;;  %v1792_v60 = vor.u32 %v1791_v3, %v1790_v57  ;;  %v1798_v40 = vor.u32 %v1797_v46, %v1796_v52  ;;  %v1795_v63 = vor.u32 %v1794_v51, %v1793_v2 }
 0x20f   : > { %v1801_v11 = vor.u32 %v1800_v28, %v1799_v12  ;;  %v1938_v61 = vsub.s32 %v1934_v0, %v1937_v54  ;;  %v1655_v1 = vadd.s32 3, %v1651_v6  ;;  %v1778_v49 = vor.u32 8388608, %v1777_v39 }
 0x210   : > { %v1647_v59 = vsel %vm1564_vm0, %v1646_v29, %v1645_v41  ;;  %vm1802_vm8 = vcmp.lt.s32.totalorder %v1783_v35, 1  ;;  %v1786_v45 = vshrl.u32 %v2396_v55, %v1785_v33  ;;  %vm1805_vm9 = vcmp.lt.s32.totalorder %v1783_v35, 4 }
 0x211   : > { %v1650_v23 = vsel %vm3669_vm10, %v3439_v26, %v1647_v59  ;;  %v1940_v8 = vsub.s32 0, %v1938_v61  ;;  %v1810_v13 = vsel %vm1802_vm8, %v1789_v44, %v1792_v60  ;;  %vm1803_vm12 = vcmp.lt.s32.totalorder %v1783_v35, 2 }
 0x212   : > { %2315 = vcosq.f32 %v1650_v23  ;;  %vm1804_vm11 = vcmp.lt.s32.totalorder %v1783_v35, 3  ;;  %v1811_v58 = vsel %vm1805_vm9, %v1798_v40, 920167782  ;;  %v1815_v53 = vsel %vm1805_vm9, %v1801_v11, 1326507024 }
 0x213   : > { %2317 = vsinq.f32 %v1650_v23  ;;  %v2140_v42 = vmin.u32 %v1940_v8, %v1938_v61  ;;  %v1807_v38 = vsel %vm1805_vm9, %v1795_v63, 2102212464  ;;  %v1812_v15 = vsel %vm1804_vm11, %v1795_v63, %v1811_v58 }
 0x214   : > { %v1814_v48 = vsel %vm1802_vm8, %v1792_v60, %v1795_v63  ;;  %v1813_v56 = vsel %vm1803_vm12, %v1810_v13, %v1812_v15  ;;  %v1816_v37 = vsel %vm1804_vm11, %v1798_v40, %v1815_v53  ;;  %v1818_v14 = vshll.u32 %v1778_v49, 8 }
 0x215   : > { %v1656_v32 = vand.u32 3, %v1655_v1  ;;  %v1942_v22 = vclz %v2140_v42  ;;  %v1806_v55 = vsel %vm1802_vm8, %v1786_v45, %v1789_v44  ;;  %v1808_v21 = vsel %vm1804_vm11, %v1792_v60, %v1807_v38 }
 0x216   : > { %v1817_v50 = vsel %vm1803_vm12, %v1814_v48, %v1816_v37  ;;  %v3702_v31 = vmul.u32.u64.low %v1818_v14, %v1813_v56  ;;  %v3703_v17 = vmul.u32.u64.high %v1818_v14, %v1813_v56, %v3702_v31  ;;  %v1809_v34 = vsel %vm1803_vm12, %v1806_v55, %v1808_v21 }
 0x217   : > { %v2141_v10 = vadd.s32 4294967294, %v1942_v22  ;;  %v3705_v27 = vmul.u32.u64.low %v1818_v14, %v1817_v50  ;;  %v3706_v5 = vmul.u32.u64.high %v1818_v14, %v1817_v50, %v3705_v27  ;;  %vm1657_vm13 = vcmp.lt.s32.totalorder %v1656_v32, 2 }
 0x218   : > { %vm1658_vm14 = vcmp.eq.s32.totalorder %v1656_v32, 0  ;;  %vm1661_vm15 = vcmp.eq.s32.totalorder %v1656_v32, 2  ;;  %v1828_v9 = vadd.s32 1, %v3703_v17  ;;  %v1930_v33 = vadd.s32 %v3644_v30, %v3642_v20 }
 0x219   : > { %vm2142_vm0 = vcmp.lt.s32.totalorder %v2141_v10, 0  ;;  %v1825_v18 = vmul.u32 %v1818_v14, %v1809_v34  ;;  %vm1827_vm1 = vc.u32 %v3706_v5, %v3702_v31  ;;  %vm1654_vm2 = vweird.f32 %v3439_v26 }
 0x21a   : > { %v1945_v7 = vsel %vm2142_vm0, 0, %v2141_v10  ;;  %v1829_v29 = vsel %vm1827_vm1, %v1828_v9, %v3703_v17  ;;  %v1960_v23 = vsub.s32 4, %v3682_v19  ;;  %vm1876_vm3 = vcmp.lt.s32.totalorder %v3540_v25, 0 }
 0x21b   : > { %v1946_v41 = vsub.s32 32, %v1945_v7  ;;  %v1950_v6 = vsub.s32 4294967266, %v1945_v7  ;;  %v1947_v43 = vshll.u32 %v1938_v61, %v1945_v7  ;;  %v1830_v46 = vadd.s32 %v1829_v29, %v1825_v18 }
 0x21c   : > { %v2316_v4 = vpop.eup %2315  ;;  %vm1875_vm4 = vcmp.le.f32.partialorder %v1874_v47, 0.7853982  ;;  %v1961_v63 = vsel %vm1876_vm3, %v1960_v23, %v3682_v19  ;;  %v1826_v42 = vadd.s32 %v3702_v31, %v3706_v5  ;;  %vm1966_vm8 = vweird.f32 %v3540_v25 }
 0x21d   : > { %v2318_v36 = vpop.eup %2317  ;;  %v1662_v0 = vxor.u32 2147483648, %v2316_v4  ;;  %v1948_v57 = vshrl.u32 %v1930_v33, %v1946_v41  ;;  %v1951_v3 = vadd.s32 127, %v1950_v6  ;;  %v1831_v52 = vadd.s32 536870912, %v1830_v46 }
 0x21e   : > { %v1659_v39 = vxor.u32 2147483648, %v2318_v36  ;;  %v1963_v8 = vsel %vm1875_vm4, 0, %v1961_v63  ;;  %vm1772_vm9 = vcmp.lt.s32.totalorder %v3602_v16, 0  ;;  %vm1771_vm12 = vcmp.le.f32.partialorder %v1770_v62, 0.7853982 }
 0x21f   : > { %v1663_v24 = vsel %vm1661_vm15, %v1662_v0, %v2318_v36  ;;  %v1949_v30 = vor.u32 %v1948_v57, %v1947_v43  ;;  %v1952_v2 = vshll.u32 %v1951_v3, 23  ;;  %v1832_v28 = vshrl.u32 %v1831_v52, 30 }
 0x220   : > { %v1660_v35 = vsel %vm1658_vm14, %v2316_v4, %v1659_v39  ;;  %v1967_v58 = vadd.s32 3, %v1963_v8  ;;  %vm1862_vm0 = vweird.f32 %v3602_v16 }
 0x221   : > { %v1664_v51 = vsel %vm1657_vm13, %v1660_v35, %v1663_v24  ;;  %v1953_v12 = vor.u32 4788187, %v1952_v2  ;;  %v1956_v54 = vcvt.s32.f32 %v1949_v30  ;;  %v1833_v44 = vshll.u32 %v1832_v28, 30 }
 0x222   : > { %v1665_v20 = vsel %vm1654_vm2, nan, %v1664_v51  ;;  %v1968_v48 = vand.u32 3, %v1967_v58  ;;  %v1856_v36 = vsub.s32 4, %v1832_v28 }
 0x223   : > { %1990 = vst [vmem:[%s2768_s8 + $0x60] sm:$0xff] %v1665_v20  ;;  %v1954_v59 = vand.u32 2147483647, %v1953_v12  ;;  %v1834_v40 = vsub.s32 %v1830_v46, %v1833_v44 }
 0x224   : > { %vm1973_vm6 = vcmp.eq.s32.totalorder %v1968_v48, 2  ;;  %vm1970_vm7 = vcmp.eq.s32.totalorder %v1968_v48, 0  ;;  %vm1969_vm10 = vcmp.lt.s32.totalorder %v1968_v48, 2  ;;  %v1857_v9 = vsel %vm1772_vm9, %v1856_v36, %v1832_v28 }
 0x225   : > { %v1957_v60 = vmul.f32 %v1956_v54, %v1954_v59  ;;  %v1836_v26 = vsub.s32 0, %v1834_v40 }
 0x227   : > { %v1958_v11 = vxor.u32 2147483648, %v1957_v60  ;;  %v2136_v49 = vmin.u32 %v1836_v26, %v1834_v40 }
 0x229   : > { %v1959_v61 = vsel %vm1876_vm3, %v1958_v11, %v1957_v60  ;;  %v1838_v45 = vclz %v2136_v49 }
 0x22a   : > { %v1962_v1 = vsel %vm1875_vm4, %v3540_v25, %v1959_v61  ;;  %v1859_v25 = vsel %vm1771_vm12, 0, %v1857_v9 }
 0x22b   : > { %2319 = vcosq.f32 %v1962_v1  ;;  %v2137_v13 = vadd.s32 4294967294, %v1838_v45  ;;  %v1863_v33 = vadd.s32 3, %v1859_v25 }
 0x22c   : > { %2321 = vsinq.f32 %v1962_v1 }
 0x22d   : > { %vm2138_vm5 = vcmp.lt.s32.totalorder %v2137_v13, 0  ;;  %v1864_v41 = vand.u32 3, %v1863_v33 }
 0x22e   : > { %v1841_v53 = vsel %vm2138_vm5, 0, %v2137_v13 }
 0x22f   : > { %v1842_v38 = vsub.s32 32, %v1841_v53  ;;  %v1846_v15 = vsub.s32 4294967266, %v1841_v53  ;;  %v1843_v47 = vshll.u32 %v1834_v40, %v1841_v53  ;;  %vm1869_vm11 = vcmp.eq.s32.totalorder %v1864_v41, 2 }
 0x230   : > { %vm1866_vm13 = vcmp.eq.s32.totalorder %v1864_v41, 0  ;;  %vm1865_vm14 = vcmp.lt.s32.totalorder %v1864_v41, 2 }
 0x231   : > { %v1844_v56 = vshrl.u32 %v1826_v42, %v1842_v38  ;;  %v1847_v37 = vadd.s32 127, %v1846_v15 }
 0x233   : > { %v1845_v22 = vor.u32 %v1844_v56, %v1843_v47  ;;  %v1848_v55 = vshll.u32 %v1847_v37, 23 }
 0x235   : > { %v2320_v19 = vpop.eup %2319  ;;  %v1849_v17 = vor.u32 4788187, %v1848_v55  ;;  %v1852_v5 = vcvt.s32.f32 %v1845_v22 }
 0x236   : > { %v2322_v14 = vpop.eup %2321  ;;  %v1974_v32 = vxor.u32 2147483648, %v2320_v19 }
 0x237   : > { %v1971_v21 = vxor.u32 2147483648, %v2322_v14  ;;  %v1850_v27 = vand.u32 2147483647, %v1849_v17 }
 0x238   : > { %v1975_v50 = vsel %vm1973_vm6, %v1974_v32, %v2322_v14 }
 0x239   : > { %v1972_v10 = vsel %vm1970_vm7, %v2320_v19, %v1971_v21  ;;  %v1853_v34 = vmul.f32 %v1852_v5, %v1850_v27 }
 0x23a   : > { %v1976_v31 = vsel %vm1969_vm10, %v1972_v10, %v1975_v50 }
 0x23b   : > { %v1977_v4 = vsel %vm1966_vm8, nan, %v1976_v31  ;;  %v1854_v0 = vxor.u32 2147483648, %v1853_v34 }
 0x23c   : > { %1993 = vst [vmem:[%s2768_s8 + $0x78] sm:$0xff] %v1977_v4 }
 0x23d   : > { %v1855_v7 = vsel %vm1772_vm9, %v1854_v0, %v1853_v34 }
 0x23e   : > { %v1858_v39 = vsel %vm1771_vm12, %v3602_v16, %v1855_v7 }
 0x23f   : > { %2323 = vcosq.f32 %v1858_v39 }
 0x240   : > { %2325 = vsinq.f32 %v1858_v39 }
 0x249   : > { %v2324_v6 = vpop.eup %2323 }
 0x24a   : > { %v2326_v24 = vpop.eup %2325  ;;  %v1870_v43 = vxor.u32 2147483648, %v2324_v6 }
 0x24b   : > { %v1867_v18 = vxor.u32 2147483648, %v2326_v24 }
 0x24c   : > { %v1871_v62 = vsel %vm1869_vm11, %v1870_v43, %v2326_v24 }
 0x24d   : > { %v1868_v35 = vsel %vm1866_vm13, %v2324_v6, %v1867_v18 }
 0x24e   : > { %v1872_v57 = vsel %vm1865_vm14, %v1868_v35, %v1871_v62 }
 0x24f   : > { %v1873_v3 = vsel %vm1862_vm0, nan, %v1872_v57 }
 0x250   : > { %1992 = vst [vmem:[%s2768_s8 + $0x70] sm:$0xff] %v1873_v3 }
 0x251   : > { %2344 = shalt.err (!%p2341_p3)
}
 0x252   : > { %s2345_s6 = scalar_lea.hbm %s3736_s30, 2048  ;;  %s2349_s11 = scalar_lea.hbm %s3788_s3, 4096 }
 0x253   : > { %p2346_p4 = scmp.ne.s32.totalorder %s3736_s30, %s2345_s6  ;;  %p2350_p9 = scmp.lt.u32.totalorder %s3736_s30, %s3788_s3 }
 0x254   : > { %p2351_p10 = scmp.lt.u32.totalorder %s2349_s11, %s2345_s6  ;;  %p2353_p12 = scmp.lt.u32.totalorder %s2345_s6, %s3736_s30 }
 0x255   : > { %p2347_p7 = pnand %p2346_p4, %p2463_p5 }
 0x256   : > { %p2352_p11 = por %p2351_p10, %p2350_p9 }
 0x257   : > { %p2348_p8 = pneg %p2347_p7 }
 0x258   : > { %p2354_p13 = por %p2353_p12, %p2352_p11 }
 0x25a   : > { %p2355_p0 = pnand %p2354_p13, %p2348_p8 }
 0x25c   : > { %2358 = shalt.err (!%p2355_p0)
}
 0x25d   : > { %s2403_s20 = smov 128   ;;  %s2404_s24 = smov 8  }
 0x25e   : > { %2213 = dma.vmem_to_hbm [thread:$0]  (%p2463_p5), %s3738_s27, 2048, %s3736_s30, %s3744_s16, %s2403_s20, %s2403_s20, %s2404_s24  }
 0x25f PF: > { %p2219_p1 = scmp.ge.s32.totalorder %s2393_s15, 2  ;;  %s2023_s25 = sand.u32 1, %s2381_s12  }
 0x260   : > { %s2024_s26 = scalar_lea.sflag [#allocation3], %s2023_s25 }
 0x261   : > { %p2216_p2 = pnand %p2219_p1, %p2467_p6 }
 0x263   : > { %2376 = dma.done.wait (!%p2216_p2), %s2024_s26, 2048  }
 0x264   : > { %2378 = vsyncadd (!%p2216_p2), %s2024_s26, 4294965248  ;;  %p13_p3 = scmp.ge.s32.totalorder %s2450_s18, 4   ;;  %s3819_s12 = smov %s2385_s13 }
 0x265   : > { %s3820_s13 = smov %s2389_s14  ;;  %s3821_s14 = smov %s2461_s21 }
 0x266   : > { %s3822_s15 = smov %s2450_s18  ;;  %15 = sbr.rel (!%p13_p3) target bundleno = 3 (0x3), region = 67 }
 0x26d   :  { %2029 = vsyncpa [#allocation3], 1 }
 0x26e   :  { %2031 = vsyncpa [#allocation3 + $0x1], 1 }

</bundles_post_ra>
